<compile_context>
chip_gen: v7x
topology: tpu7x:2x2x1
jax: 0.10.0
libtpu: 0.0.40
codegen_flags: <defaults>
</compile_context>

<pallas_src>
import jax
import jax.numpy as jnp
from jax.experimental import pallas as pl
from jax.experimental.pallas import tpu as pltpu

KSIZE = 5
BN_EPS = 1e-5
LANE = 128


def _round_up(n, m):
    return ((n + m - 1) // m) * m


def _bf16_exact(a):
    # Round values to bf16-representable f32 (test-only) so the bf16 MXU weight
    # path is exact and the kernel-vs-reference comparison stays tight.
    return a.astype(jnp.bfloat16).astype(jnp.float32)


# ----------------------------------------------------------------------------
# Pallas kernel: 4 bf16 GEMMs (f32 accumulation), batch tile on sublanes,
# lane-dense features, f32 bias + ReLU epilogues.
# ----------------------------------------------------------------------------
def cnn_kernel(x_ref,
               w1_ref, b1_ref,
               w2_ref, b2_ref,
               w3_ref, b3_ref,
               wfc_ref, bfc_ref,
               o_ref):
    h = x_ref[...].astype(jnp.bfloat16)                             # (B, C0*L0)
    h = jnp.maximum(
        jnp.dot(h, w1_ref[...], preferred_element_type=jnp.float32) + b1_ref[...],
        0.0)
    h = jnp.maximum(
        jnp.dot(h.astype(jnp.bfloat16), w2_ref[...],
                preferred_element_type=jnp.float32) + b2_ref[...],
        0.0)
    h = jnp.maximum(
        jnp.dot(h.astype(jnp.bfloat16), w3_ref[...],
                preferred_element_type=jnp.float32) + b3_ref[...],
        0.0)
    o_ref[...] = (jnp.dot(h.astype(jnp.bfloat16), wfc_ref[...],
                          preferred_element_type=jnp.float32) + bfc_ref[...])


def cnn_forward(x, packed, *, b_tile=512):
    """x: (N, C, L) float32; packed: output of pack_params. Returns (N, n_out) f32."""
    n, c0, l0 = x.shape
    n_out = packed["n_out"]
    n_out_pad = packed["bfc"].shape[-1]
    x2 = x.reshape(n, c0 * l0)                      # torch flatten order c*L + l

    # Batch tile: multiple of 8 sublanes, capped so the grid has >= 2 steps whenever
    # n > 8 (keeps both v7x TensorCores busy via the "parallel" batch axis).
    bt = min(_round_up(b_tile, 8), _round_up(pl.cdiv(n, 2), 8))
    grid = (pl.cdiv(n, bt),)                        # ragged last block masked by Pallas

    order = ("w1", "b1", "w2", "b2", "w3", "b3", "wfc", "bfc")
    flat = [packed[k] for k in order]

    def resident_spec(a):
        # Constant block index => DMA'd to VMEM once, resident across all grid steps.
        nd = a.ndim
        return pl.BlockSpec(a.shape, lambda i, _nd=nd: (0,) * _nd)

    grid_spec = pltpu.PrefetchScalarGridSpec(
        num_scalar_prefetch=0,
        grid=grid,
        in_specs=[pl.BlockSpec((bt, c0 * l0), lambda i: (i, 0))]
                + [resident_spec(a) for a in flat],
        out_specs=pl.BlockSpec((bt, n_out_pad), lambda i: (i, 0)),
    )
    out = pl.pallas_call(
        cnn_kernel,
        out_shape=jax.ShapeDtypeStruct((n, n_out_pad), jnp.float32),
        grid_spec=grid_spec,
        compiler_params=pltpu.CompilerParams(
            dimension_semantics=("parallel",)),     # batch tiles are independent
    )(x2, *flat)
    return out[:, :n_out]


# ----------------------------------------------------------------------------
# Host-side parameter construction (mirrors the torch module's init) + packing.
# ----------------------------------------------------------------------------
def init_params(key, n_channels, n_samples, n_filters, n_output):
    l1, l2, l3 = n_filters, n_filters // 2, n_filters // 4
    L3 = n_samples - 3 * (KSIZE - 1)
    size_after_conv = l3 * L3
    k1, k2, k3, k4 = jax.random.split(key, 4)

    def glorot(k, shape, fan_in, fan_out):
        bound = (6.0 / (fan_in + fan_out)) ** 0.5
        return jax.random.uniform(k, shape, jnp.float32, -bound, bound)

    def bn(c):  # gamma=1, beta=0, running_mean=0, running_var=1
        return (jnp.ones((c,), jnp.float32), jnp.zeros((c,), jnp.float32),
                jnp.zeros((c,), jnp.float32), jnp.ones((c,), jnp.float32))

    w1 = glorot(k1, (l1, n_channels, KSIZE), n_channels * KSIZE, l1 * KSIZE)
    w2 = glorot(k2, (l2, l1, KSIZE), l1 * KSIZE, l2 * KSIZE)
    w3 = glorot(k3, (l3, l2, KSIZE), l2 * KSIZE, l3 * KSIZE)
    wfc = glorot(k4, (n_output, size_after_conv), size_after_conv, n_output)
    g1, be1, m1, v1 = bn(l1)
    g2, be2, m2, v2 = bn(l2)
    g3, be3, m3, v3 = bn(l3)
    return dict(
        w1=w1, b1=jnp.zeros((l1,), jnp.float32), g1=g1, be1=be1, m1=m1, v1=v1,
        w2=w2, b2=jnp.zeros((l2,), jnp.float32), g2=g2, be2=be2, m2=m2, v2=v2,
        w3=w3, b3=jnp.zeros((l3,), jnp.float32), g3=g3, be3=be3, m3=m3, v3=v3,
        wfc=wfc, bfc=jnp.zeros((n_output,), jnp.float32),
    )


def _conv_as_band(w, lin):
    # w: (Cout, Cin, K). Returns (Cin*Lin, Cout*Lout) banded matrix such that
    # y_flat = x_flat @ band equals the 'valid' Conv1d, with flatten index c*L + l.
    cout, cin, k = w.shape
    lout = lin - k + 1
    li = jnp.arange(lin)
    lo = jnp.arange(lout)
    kk = jnp.arange(k)
    sel = (li[None, :, None] == (lo[None, None, :] + kk[:, None, None])).astype(w.dtype)
    band = jnp.einsum('oik,klm->ilom', w, sel)      # (Cin, Lin, Cout, Lout)
    return band.reshape(cin * lin, cout * lout)


def pack_params(params, n_samples):
    packed = {}
    l_in = n_samples
    for i in (1, 2, 3):
        w, b = params[f"w{i}"], params[f"b{i}"]
        g, be = params[f"g{i}"], params[f"be{i}"]
        m, v = params[f"m{i}"], params[f"v{i}"]
        s = g / jnp.sqrt(v + BN_EPS)                 # eval-mode BN fold
        t = be - m * s
        w_folded = w * s[:, None, None]
        b_folded = s * b + t
        l_out = l_in - KSIZE + 1
        packed[f"w{i}"] = _conv_as_band(w_folded, l_in).astype(jnp.bfloat16)
        packed[f"b{i}"] = jnp.repeat(b_folded, l_out)[None, :].astype(jnp.float32)
        l_in = l_out
    # Pad the classifier head to a lane-dense width (multiple of 128) with zeros so
    # the kernel's output stores are unmasked; wrapper slices back to n_out.
    n_out = params["bfc"].shape[-1]
    n_out_pad = _round_up(max(n_out, LANE), LANE)
    wfc = jnp.pad(params["wfc"].T, ((0, 0), (0, n_out_pad - n_out)))   # (C3*L3, pad)
    bfc = jnp.pad(params["bfc"], (0, n_out_pad - n_out))
    packed["wfc"] = wfc.astype(jnp.bfloat16)
    packed["bfc"] = bfc[None, :].astype(jnp.float32)
    packed["n_out"] = n_out
    return packed


# ----------------------------------------------------------------------------
# Plain-JAX f32 reference (raw conv / BN params) for correctness checking.
# ----------------------------------------------------------------------------
def ref_forward(x, params):
    def conv1d(h, w, b):
        k = w.shape[-1]
        lout = h.shape[-1] - k + 1
        acc = jnp.zeros((h.shape[0], w.shape[0], lout), jnp.float32)
        for kk in range(k):
            acc = acc + jnp.einsum('oi,nil->nol', w[:, :, kk], h[:, :, kk:kk + lout])
        return acc + b.reshape(1, -1, 1)

    def bn_relu(h, g, be, m, v):
        s = g / jnp.sqrt(v + BN_EPS)
        t = be - m * s
        return jnp.maximum(h * s.reshape(1, -1, 1) + t.reshape(1, -1, 1), 0.0)

    h = bn_relu(conv1d(x, params["w1"], params["b1"]),
                params["g1"], params["be1"], params["m1"], params["v1"])
    h = bn_relu(conv1d(h, params["w2"], params["b2"]),
                params["g2"], params["be2"], params["m2"], params["v2"])
    h = bn_relu(conv1d(h, params["w3"], params["b3"]),
                params["g3"], params["be3"], params["m3"], params["v3"])
    flat = h.reshape(h.shape[0], -1)
    return flat @ params["wfc"].T + params["bfc"]


if __name__ == "__main__":
    n_output, n_channels, n_samples, n_filters = 5, 4, 32, 32

    key = jax.random.PRNGKey(0)
    pkey, xkey = jax.random.split(key)
    params = init_params(pkey, n_channels, n_samples, n_filters, n_output)
    # Test-only: make weights bf16-representable so the bf16 MXU weight path is
    # exact; the remaining kernel/reference difference is only the bf16 rounding
    # of intermediate activations (hence the 2e-2 tolerance below).
    for name in ("w1", "w2", "w3", "wfc"):
        params[name] = _bf16_exact(params[name])
    packed = pack_params(params, n_samples)

    # (batch, b_tile): exercise a single ragged block, a multi-step grid with a
    # ragged last block, and the v7x two-step grid sizing.
    for batch, b_tile in ((2, 512), (20, 8), (37, 512)):
        x = _bf16_exact(jax.random.normal(jax.random.fold_in(xkey, batch),
                                          (batch, n_channels, n_samples),
                                          jnp.float32))
        y = cnn_forward(x, packed, b_tile=b_tile)
        jax.block_until_ready(y)
        y_ref = ref_forward(x, params)
        assert y.shape == (batch, n_output)
        assert jnp.allclose(y, y_ref, atol=2e-2, rtol=2e-2), \
            f"mismatch vs reference (batch={batch})"

    print("KERNEL_OK")
</pallas_src>

<mosaic_0001>
module attributes {stable_mosaic.version = 11 : i64} {
  func.func @cnn_kernel(%arg0: i32, %arg1: memref<8x128xf32, #tpu.memory_space<vmem>>, %arg2: memref<128x896xbf16, #tpu.memory_space<vmem>>, %arg3: memref<1x896xf32, #tpu.memory_space<vmem>>, %arg4: memref<896x384xbf16, #tpu.memory_space<vmem>>, %arg5: memref<1x384xf32, #tpu.memory_space<vmem>>, %arg6: memref<384x160xbf16, #tpu.memory_space<vmem>>, %arg7: memref<1x160xf32, #tpu.memory_space<vmem>>, %arg8: memref<160x128xbf16, #tpu.memory_space<vmem>>, %arg9: memref<1x128xf32, #tpu.memory_space<vmem>>, %arg10: memref<8x128xf32, #tpu.memory_space<vmem>>) attributes {dimension_semantics = [#tpu.dimension_semantics<parallel>], iteration_bounds = array<i64: 1>, scalar_prefetch = 0 : i64, scratch_operands = 0 : i64, tpu.core_type = #tpu.core_type<tc>, window_params = [{transform_indices = @transform_0, window_bounds = array<i64: 8, 128>}, {pipeline_mode = #tpu.pipeline_mode<synchronous>, transform_indices = @transform_1, window_bounds = array<i64: 128, 896>}, {pipeline_mode = #tpu.pipeline_mode<synchronous>, transform_indices = @transform_2, window_bounds = array<i64: 1, 896>}, {pipeline_mode = #tpu.pipeline_mode<synchronous>, transform_indices = @transform_3, window_bounds = array<i64: 896, 384>}, {pipeline_mode = #tpu.pipeline_mode<synchronous>, transform_indices = @transform_4, window_bounds = array<i64: 1, 384>}, {pipeline_mode = #tpu.pipeline_mode<synchronous>, transform_indices = @transform_5, window_bounds = array<i64: 384, 160>}, {pipeline_mode = #tpu.pipeline_mode<synchronous>, transform_indices = @transform_6, window_bounds = array<i64: 1, 160>}, {pipeline_mode = #tpu.pipeline_mode<synchronous>, transform_indices = @transform_7, window_bounds = array<i64: 160, 128>}, {pipeline_mode = #tpu.pipeline_mode<synchronous>, transform_indices = @transform_8, window_bounds = array<i64: 1, 128>}, {transform_indices = @transform_9, window_bounds = array<i64: 8, 128>}]} {
    %c0 = arith.constant 0 : index
    %c0_0 = arith.constant 0 : index
    %0 = vector.load %arg1[%c0, %c0_0] : memref<8x128xf32, #tpu.memory_space<vmem>>, vector<8x128xf32>
    %1 = arith.truncf %0 : vector<8x128xf32> to vector<8x128xbf16>
    %c0_1 = arith.constant 0 : index
    %c0_2 = arith.constant 0 : index
    %2 = vector.load %arg2[%c0_1, %c0_2] : memref<128x896xbf16, #tpu.memory_space<vmem>>, vector<128x896xbf16>
    %cst = arith.constant dense<0.000000e+00> : vector<8x896xf32>
    %3 = tpu.matmul %1, %2, %cst {dimension_numbers = #tpu.dot_dimension_numbers<[1], [0], [0], [1], [0, 0, 1, 1], [], []>} : vector<8x128xbf16>, vector<128x896xbf16>, vector<8x896xf32> -> vector<8x896xf32>
    %c0_3 = arith.constant 0 : index
    %c0_4 = arith.constant 0 : index
    %4 = vector.load %arg3[%c0_3, %c0_4] : memref<1x896xf32, #tpu.memory_space<vmem>>, vector<1x896xf32>
    %5 = vector.broadcast %4 : vector<1x896xf32> to vector<8x896xf32>
    %6 = arith.addf %3, %5 : vector<8x896xf32>
    %cst_5 = arith.constant 0.000000e+00 : f32
    %7 = vector.broadcast %cst_5 : f32 to vector<8x896xf32>
    %8 = arith.maximumf %6, %7 : vector<8x896xf32>
    %9 = arith.truncf %8 : vector<8x896xf32> to vector<8x896xbf16>
    %c0_6 = arith.constant 0 : index
    %c0_7 = arith.constant 0 : index
    %10 = vector.load %arg4[%c0_6, %c0_7] : memref<896x384xbf16, #tpu.memory_space<vmem>>, vector<896x384xbf16>
    %cst_8 = arith.constant dense<0.000000e+00> : vector<8x384xf32>
    %11 = tpu.matmul %9, %10, %cst_8 {dimension_numbers = #tpu.dot_dimension_numbers<[1], [0], [0], [1], [0, 0, 1, 1], [], []>} : vector<8x896xbf16>, vector<896x384xbf16>, vector<8x384xf32> -> vector<8x384xf32>
    %c0_9 = arith.constant 0 : index
    %c0_10 = arith.constant 0 : index
    %12 = vector.load %arg5[%c0_9, %c0_10] : memref<1x384xf32, #tpu.memory_space<vmem>>, vector<1x384xf32>
    %13 = vector.broadcast %12 : vector<1x384xf32> to vector<8x384xf32>
    %14 = arith.addf %11, %13 : vector<8x384xf32>
    %cst_11 = arith.constant 0.000000e+00 : f32
    %15 = vector.broadcast %cst_11 : f32 to vector<8x384xf32>
    %16 = arith.maximumf %14, %15 : vector<8x384xf32>
    %17 = arith.truncf %16 : vector<8x384xf32> to vector<8x384xbf16>
    %c0_12 = arith.constant 0 : index
    %c0_13 = arith.constant 0 : index
    %18 = vector.load %arg6[%c0_12, %c0_13] : memref<384x160xbf16, #tpu.memory_space<vmem>>, vector<384x160xbf16>
    %cst_14 = arith.constant dense<0.000000e+00> : vector<8x160xf32>
    %19 = tpu.matmul %17, %18, %cst_14 {dimension_numbers = #tpu.dot_dimension_numbers<[1], [0], [0], [1], [0, 0, 1, 1], [], []>} : vector<8x384xbf16>, vector<384x160xbf16>, vector<8x160xf32> -> vector<8x160xf32>
    %c0_15 = arith.constant 0 : index
    %c0_16 = arith.constant 0 : index
    %20 = vector.load %arg7[%c0_15, %c0_16] : memref<1x160xf32, #tpu.memory_space<vmem>>, vector<1x160xf32>
    %21 = vector.broadcast %20 : vector<1x160xf32> to vector<8x160xf32>
    %22 = arith.addf %19, %21 : vector<8x160xf32>
    %cst_17 = arith.constant 0.000000e+00 : f32
    %23 = vector.broadcast %cst_17 : f32 to vector<8x160xf32>
    %24 = arith.maximumf %22, %23 : vector<8x160xf32>
    %25 = arith.truncf %24 : vector<8x160xf32> to vector<8x160xbf16>
    %c0_18 = arith.constant 0 : index
    %c0_19 = arith.constant 0 : index
    %26 = vector.load %arg8[%c0_18, %c0_19] : memref<160x128xbf16, #tpu.memory_space<vmem>>, vector<160x128xbf16>
    %cst_20 = arith.constant dense<0.000000e+00> : vector<8x128xf32>
    %27 = tpu.matmul %25, %26, %cst_20 {dimension_numbers = #tpu.dot_dimension_numbers<[1], [0], [0], [1], [0, 0, 1, 1], [], []>} : vector<8x160xbf16>, vector<160x128xbf16>, vector<8x128xf32> -> vector<8x128xf32>
    %c0_21 = arith.constant 0 : index
    %c0_22 = arith.constant 0 : index
    %28 = vector.load %arg9[%c0_21, %c0_22] : memref<1x128xf32, #tpu.memory_space<vmem>>, vector<1x128xf32>
    %29 = vector.broadcast %28 : vector<1x128xf32> to vector<8x128xf32>
    %30 = arith.addf %27, %29 : vector<8x128xf32>
    %c0_23 = arith.constant 0 : index
    %c0_24 = arith.constant 0 : index
    %31 = vector.load %arg10[%c0_23, %c0_24] : memref<8x128xf32, #tpu.memory_space<vmem>>, vector<8x128xf32>
    tpu.vector_store %arg10[%c0_23, %c0_24], %30 {strides = array<i32>} : memref<8x128xf32, #tpu.memory_space<vmem>>, vector<8x128xf32>,
    return
  }
  func.func @transform_0(%arg0: i32) -> (i32, i32) {
    %c0_i32 = arith.constant 0 : i32
    %c0_i32_0 = arith.constant 0 : i32
    return %arg0, %c0_i32 : i32, i32
  }
  func.func @transform_1(%arg0: i32) -> (i32, i32) {
    %c0_i32 = arith.constant 0 : i32
    %c0_i32_0 = arith.constant 0 : i32
    %c0_i32_1 = arith.constant 0 : i32
    return %c0_i32, %c0_i32_0 : i32, i32
  }
  func.func @transform_2(%arg0: i32) -> (i32, i32) {
    %c0_i32 = arith.constant 0 : i32
    %c0_i32_0 = arith.constant 0 : i32
    %c0_i32_1 = arith.constant 0 : i32
    return %c0_i32, %c0_i32_0 : i32, i32
  }
  func.func @transform_3(%arg0: i32) -> (i32, i32) {
    %c0_i32 = arith.constant 0 : i32
    %c0_i32_0 = arith.constant 0 : i32
    %c0_i32_1 = arith.constant 0 : i32
    return %c0_i32, %c0_i32_0 : i32, i32
  }
  func.func @transform_4(%arg0: i32) -> (i32, i32) {
    %c0_i32 = arith.constant 0 : i32
    %c0_i32_0 = arith.constant 0 : i32
    %c0_i32_1 = arith.constant 0 : i32
    return %c0_i32, %c0_i32_0 : i32, i32
  }
  func.func @transform_5(%arg0: i32) -> (i32, i32) {
    %c0_i32 = arith.constant 0 : i32
    %c0_i32_0 = arith.constant 0 : i32
    %c0_i32_1 = arith.constant 0 : i32
    return %c0_i32, %c0_i32_0 : i32, i32
  }
  func.func @transform_6(%arg0: i32) -> (i32, i32) {
    %c0_i32 = arith.constant 0 : i32
    %c0_i32_0 = arith.constant 0 : i32
    %c0_i32_1 = arith.constant 0 : i32
    return %c0_i32, %c0_i32_0 : i32, i32
  }
  func.func @transform_7(%arg0: i32) -> (i32, i32) {
    %c0_i32 = arith.constant 0 : i32
    %c0_i32_0 = arith.constant 0 : i32
    %c0_i32_1 = arith.constant 0 : i32
    return %c0_i32, %c0_i32_0 : i32, i32
  }
  func.func @transform_8(%arg0: i32) -> (i32, i32) {
    %c0_i32 = arith.constant 0 : i32
    %c0_i32_0 = arith.constant 0 : i32
    %c0_i32_1 = arith.constant 0 : i32
    return %c0_i32, %c0_i32_0 : i32, i32
  }
  func.func @transform_9(%arg0: i32) -> (i32, i32) {
    %c0_i32 = arith.constant 0 : i32
    %c0_i32_0 = arith.constant 0 : i32
    return %arg0, %c0_i32 : i32, i32
  }
}

</mosaic_0001>

<bundles_post_ra>
// kernel: tpu_custom_call.1
= control target key start
LH: loop header
LB: loop body
LE: loop exit
PB: predicated region body
PF: predicated region fallthrough
CT: control target
= control target key end

     0   :  { %14 = vsyncpa [#allocation3], 0  ;;  %s4021_s0 = inlined_call_operand.vmem [shape: f32[2,128], index: 0, kind: input, shape index: {}]   ;;  %s4022_s1 = inlined_call_operand.vmem [shape: bf16[128,896], index: 1, kind: input, shape index: {}]   ;;  %s4023_s2 = inlined_call_operand.vmem [shape: f32[1,896], index: 2, kind: input, shape index: {}]   ;;  %s4024_s3 = inlined_call_operand.hbm [shape: bf16[896,384], index: 3, kind: input, shape index: {}]   ;;  %s4025_s4 = inlined_call_operand.vmem [shape: f32[1,384], index: 4, kind: input, shape index: {}]   ;;  %s4026_s5 = inlined_call_operand.vmem [shape: bf16[384,160], index: 5, kind: input, shape index: {}]   ;;  %s4027_s6 = inlined_call_operand.vmem [shape: f32[1,160], index: 6, kind: input, shape index: {}]   ;;  %s4028_s7 = inlined_call_operand.vmem [shape: bf16[160,128], index: 7, kind: input, shape index: {}]   ;;  %s4029_s8 = inlined_call_operand.vmem [shape: f32[1,128], index: 8, kind: input, shape index: {}]   ;;  %s4030_s9 = inlined_call_operand.hbm [shape: f32[2,128], index: 9, kind: output, shape index: {}]  }
   0x1   :  { %15 = vsyncpa [#allocation4], 0  ;;  %s3489_s30 = smov [#allocation2]   ;;  %s3441_s13 = scalar_lea.hbm %s4024_s3, 21504 }
   0x2   :  { %s27_s10 = sshll.u32 %s3489_s30, 4  ;;  %p3442_p0 = scmp.ne.s32.totalorder %s4024_s3, %s3441_s13  ;;  %s28_s10 = int_to_ptr.vmem [resolvable:$true] %s27_s10 }
   0x3   :  { %p3445_p1 = scmp.lt.u32.totalorder %s3441_s13, %s4024_s3 }
   0x5   :  { %p3447_p2 = pnand %p3445_p1, %p3442_p0 }
   0x7   :  { %3450 = shalt.err (!%p3447_p2)
}
   0x8   :  { %s3451_s18 = scalar_lea.vmem %s28_s10, 21504  ;;  %p3456_p4 = scmp.lt.s32.totalorder %s28_s10, %s28_s10 }
   0x9   :  { %p3452_p3 = scmp.ne.s32.totalorder %s28_s10, %s3451_s18  ;;  %p3457_p5 = scmp.lt.s32.totalorder %s3451_s18, %s3451_s18 }
   0xb   :  { %p3458_p6 = por %p3457_p5, %p3456_p4 }
   0xd   :  { %p3459_p7 = pnand %p3458_p6, %p3452_p3 }
   0xf   :  { %3462 = shalt.err (!%p3459_p7)
}
  0x10   :  { %s3490_s19 = smov 192   ;;  %s3491_s20 = smov 12  }
  0x11   :  { %33 = dma.hbm_to_vmem [thread:$0]  %s4024_s3, 21504, %s28_s10, [#allocation3], %s3490_s19, %s3490_s19, %s3491_s20  }
  0x12   :  { %3485 = dma.done.wait [#allocation3], 21504  }
  0x13   :  { %3486 = vsyncadd [#allocation3], 4294945792  ;;  %v3492_v0 = vmov 0   ;;  %v3055_v1 = vld [vmem:[%s4022_s1 + $0x4] ss:$28 sps:$4 sm:$0xff]   ;;  %v3493_v59 = vmov 0.0  }
  0x14   :  { %471 = vmatprep.mubr.bf16.mxu1 %v3492_v0  ;;  %553 = vmatprep.mubr.bf16.mxu0 %v3492_v0  ;;  %v3057_v2 = vld [vmem:[%s4022_s1] ss:$28 sps:$4 sm:$0xff]   ;;  %v3060_v4 = vld [vmem:[%s4022_s1 + $0x38] ss:$28 sps:$4 sm:$0xff]   ;;  %v3063_v6 = vld [vmem:[%s4022_s1 + $0x70] ss:$28 sps:$4 sm:$0xff]  }
  0x15   :  { %439 = vmatprep.subr.bf16.mxu1 %v3055_v1  ;;  %v3058_v3 = vld [vmem:[%s4022_s1 + $0x3c] ss:$28 sps:$4 sm:$0xff]   ;;  %v3061_v5 = vld [vmem:[%s4022_s1 + $0x74] ss:$28 sps:$4 sm:$0xff]   ;;  %v3064_v7 = vld [vmem:[%s4022_s1 + $0xac] ss:$28 sps:$4 sm:$0xff]  }
  0x16   :  { %440 = vmatpush1.bf16.msra.mxu1 %v3057_v2  ;;  %v3066_v8 = vld [vmem:[%s4022_s1 + $0xa8] ss:$28 sps:$4 sm:$0xff]   ;;  %v3069_v10 = vld [vmem:[%s4022_s1 + $0xe0] ss:$28 sps:$4 sm:$0xff]   ;;  %v3072_v12 = vld [vmem:[%s4022_s1 + $0x118] ss:$28 sps:$4 sm:$0xff]  }
  0x17   :  { %441 = vmatprep.subr.bf16.mxu1 %v3058_v3  ;;  %v3067_v9 = vld [vmem:[%s4022_s1 + $0xe4] ss:$28 sps:$4 sm:$0xff]   ;;  %v3070_v11 = vld [vmem:[%s4022_s1 + $0x11c] ss:$28 sps:$4 sm:$0xff]   ;;  %v3073_v13 = vld [vmem:[%s4022_s1 + $0x154] ss:$28 sps:$4 sm:$0xff]  }
  0x18   :  { %v3075_v14 = vld [vmem:[%s4022_s1 + $0x150] ss:$28 sps:$4 sm:$0xff]   ;;  %v3108_v19 = vld [vmem:[%s4022_s1 + $0x48] ss:$28 sps:$4 sm:$0xff]   ;;  %v3111_v24 = vld [vmem:[%s4022_s1 + $0x80] ss:$28 sps:$4 sm:$0xff]  }
  0x19   :  { %v3103_v15 = vld [vmem:[%s4022_s1 + $0x14] ss:$28 sps:$4 sm:$0xff]   ;;  %v3106_v17 = vld [vmem:[%s4022_s1 + $0x4c] ss:$28 sps:$4 sm:$0xff]   ;;  %v3109_v21 = vld [vmem:[%s4022_s1 + $0x84] ss:$28 sps:$4 sm:$0xff]  }
  0x1a   :  { %442 = vmatpush1.bf16.msra.mxu1 %v3060_v4  ;;  %v3105_v16 = vld [vmem:[%s4022_s1 + $0x10] ss:$28 sps:$4 sm:$0xff]   ;;  %521 = vmatprep.subr.bf16.mxu0 %v3103_v15  ;;  %v3078_v20 = vld [vmem:[%s4022_s1 + $0x188] ss:$28 sps:$4 sm:$0xff]   ;;  %v3112_v26 = vld [vmem:[%s4022_s1 + $0xbc] ss:$28 sps:$4 sm:$0xff]  }
  0x1b   :  { %443 = vmatprep.subr.bf16.mxu1 %v3061_v5  ;;  %v3076_v18 = vld [vmem:[%s4022_s1 + $0x18c] ss:$28 sps:$4 sm:$0xff]   ;;  %522 = vmatpush1.bf16.msra.mxu0 %v3105_v16  ;;  %v48_v22 = vld [vmem:[%s4021_s0] sm:$0xff]  ;;  %v3114_v29 = vld [vmem:[%s4022_s1 + $0xb8] ss:$28 sps:$4 sm:$0xff]   ;;  %vm3494_vm0 = vmmov 0  }
  0x1c   :  { %523 = vmatprep.subr.bf16.mxu0 %v3106_v17  ;;  %v3081_v23 = vld [vmem:[%s4022_s1 + $0xc] ss:$28 sps:$4 sm:$0xff]   ;;  %v3634_v25 = vpack.c.bf16 %v48_v22, %v48_v22  ;;  %v3084_v28 = vld [vmem:[%s4022_s1 + $0x44] ss:$28 sps:$4 sm:$0xff]   ;;  %v3115_v30 = vld [vmem:[%s4022_s1 + $0xf4] ss:$28 sps:$4 sm:$0xff]  }
  0x1d   :  { %v3079_v27 = vld [vmem:[%s4022_s1 + $0x8] ss:$28 sps:$4 sm:$0xff]   ;;  %v3082_v31 = vld [vmem:[%s4022_s1 + $0x40] ss:$28 sps:$4 sm:$0xff]   ;;  %v3117_v33 = vld [vmem:[%s4022_s1 + $0xf0] ss:$28 sps:$4 sm:$0xff]  }
  0x1e   :  { %444 = vmatpush1.bf16.msra.mxu1 %v3063_v6  ;;  %v3087_v32 = vld [vmem:[%s4022_s1 + $0x7c] ss:$28 sps:$4 sm:$0xff]   ;;  %v3118_v34 = vld [vmem:[%s4022_s1 + $0x12c] ss:$28 sps:$4 sm:$0xff]   ;;  %v3090_v36 = vld [vmem:[%s4022_s1 + $0xb4] ss:$28 sps:$4 sm:$0xff]  }
  0x1f   :  { %445 = vmatprep.subr.bf16.mxu1 %v3064_v7  ;;  %524 = vmatpush1.bf16.msra.mxu0 %v3108_v19  ;;  %v3085_v35 = vld [vmem:[%s4022_s1 + $0x78] ss:$28 sps:$4 sm:$0xff]   ;;  %v3120_v37 = vld [vmem:[%s4022_s1 + $0x128] ss:$28 sps:$4 sm:$0xff]   ;;  %v3088_v39 = vld [vmem:[%s4022_s1 + $0xb0] ss:$28 sps:$4 sm:$0xff]  }
  0x20   :  { %525 = vmatprep.subr.bf16.mxu0 %v3109_v21  ;;  %v3121_v38 = vld [vmem:[%s4022_s1 + $0x164] ss:$28 sps:$4 sm:$0xff]   ;;  %v3093_v40 = vld [vmem:[%s4022_s1 + $0xec] ss:$28 sps:$4 sm:$0xff]   ;;  %v3124_v42 = vld [vmem:[%s4022_s1 + $0x19c] ss:$28 sps:$4 sm:$0xff]  }
  0x21   :  { %v3123_v41 = vld [vmem:[%s4022_s1 + $0x160] ss:$28 sps:$4 sm:$0xff]   ;;  %v3091_v43 = vld [vmem:[%s4022_s1 + $0xe8] ss:$28 sps:$4 sm:$0xff]   ;;  %v3126_v45 = vld [vmem:[%s4022_s1 + $0x198] ss:$28 sps:$4 sm:$0xff]  }
  0x22   :  { %446 = vmatpush1.bf16.msra.mxu1 %v3066_v8  ;;  %v3096_v44 = vld [vmem:[%s4022_s1 + $0x124] ss:$28 sps:$4 sm:$0xff]   ;;  %v3099_v48 = vld [vmem:[%s4022_s1 + $0x15c] ss:$28 sps:$4 sm:$0xff]   ;;  %v3102_v52 = vld [vmem:[%s4022_s1 + $0x194] ss:$28 sps:$4 sm:$0xff]  }
  0x23   :  { %447 = vmatprep.subr.bf16.mxu1 %v3067_v9  ;;  %526 = vmatpush1.bf16.msra.mxu0 %v3111_v24  ;;  %v3137_v46 = vld [vmem:[#allocation2 + $0x4] ss:$12 sps:$4 sm:$0xff]   ;;  %v3094_v47 = vld [vmem:[%s4022_s1 + $0x120] ss:$28 sps:$4 sm:$0xff]   ;;  %v3097_v51 = vld [vmem:[%s4022_s1 + $0x158] ss:$28 sps:$4 sm:$0xff]  }
  0x24   :  { %527 = vmatprep.subr.bf16.mxu0 %v3112_v26  ;;  %v3135_v49 = vld [vmem:[#allocation2] ss:$12 sps:$4 sm:$0xff]   ;;  %v3140_v50 = vld [vmem:[#allocation2 + $0x1c] ss:$12 sps:$4 sm:$0xff]   ;;  %v3138_v53 = vld [vmem:[#allocation2 + $0x18] ss:$12 sps:$4 sm:$0xff]  }
  0x25   :  { %v3143_v54 = vld [vmem:[#allocation2 + $0x34] ss:$12 sps:$4 sm:$0xff]   ;;  %v3100_v55 = vld [vmem:[%s4022_s1 + $0x190] ss:$28 sps:$4 sm:$0xff]   ;;  %v3129_v63 = vld [vmem:[%s4022_s1 + $0x88] ss:$28 sps:$4 sm:$0xff]  }
  0x26   :  { %448 = vmatpush1.bf16.msra.mxu1 %v3069_v10  ;;  %v3141_v56 = vld [vmem:[#allocation2 + $0x30] ss:$12 sps:$4 sm:$0xff]   ;;  %v3146_v57 = vld [vmem:[#allocation2 + $0x4c] ss:$12 sps:$4 sm:$0xff]   ;;  %v3144_v60 = vld [vmem:[#allocation2 + $0x48] ss:$12 sps:$4 sm:$0xff]  }
  0x27   :  { %449 = vmatprep.subr.bf16.mxu1 %v3070_v11  ;;  %528 = vmatpush1.bf16.msra.mxu0 %v3114_v29  ;;  %v3127_v58 = vld [vmem:[%s4022_s1 + $0x18] ss:$28 sps:$4 sm:$0xff]   ;;  %v3149_v61 = vld [vmem:[#allocation2 + $0x64] ss:$12 sps:$4 sm:$0xff]   ;;  %v3147_v1 = vld [vmem:[#allocation2 + $0x60] ss:$12 sps:$4 sm:$0xff]  }
  0x28   :  { %529 = vmatprep.subr.bf16.mxu0 %v3115_v30  ;;  %v3128_v62 = vld [vmem:[%s4022_s1 + $0x50] ss:$28 sps:$4 sm:$0xff]   ;;  %v3152_v2 = vld [vmem:[#allocation2 + $0x7c] ss:$12 sps:$4 sm:$0xff]   ;;  %v3150_v3 = vld [vmem:[#allocation2 + $0x78] ss:$12 sps:$4 sm:$0xff]  }
  0x29   :  { %v3155_v4 = vld [vmem:[#allocation2 + $0x94] ss:$12 sps:$4 sm:$0xff]   ;;  %v3153_v6 = vld [vmem:[#allocation2 + $0x90] ss:$12 sps:$4 sm:$0xff]   ;;  %v3158_v7 = vld [vmem:[#allocation2 + $0xac] ss:$12 sps:$4 sm:$0xff]  }
  0x2a   :  { %450 = vmatpush1.bf16.msra.mxu1 %v3072_v12  ;;  %v3130_v5 = vld [vmem:[%s4022_s1 + $0xc0] ss:$28 sps:$4 sm:$0xff]   ;;  %v3131_v8 = vld [vmem:[%s4022_s1 + $0xf8] ss:$28 sps:$4 sm:$0xff]   ;;  %v3161_v10 = vld [vmem:[#allocation2 + $0xc4] ss:$12 sps:$4 sm:$0xff]  }
  0x2b   :  { %451 = vmatprep.subr.bf16.mxu1 %v3073_v13  ;;  %530 = vmatpush1.bf16.msra.mxu0 %v3117_v33  ;;  %v3156_v9 = vld [vmem:[#allocation2 + $0xa8] ss:$12 sps:$4 sm:$0xff]   ;;  %v3132_v11 = vld [vmem:[%s4022_s1 + $0x130] ss:$28 sps:$4 sm:$0xff]   ;;  %v3164_v15 = vld [vmem:[#allocation2 + $0xd8] ss:$12 sps:$4 sm:$0xff]  }
  0x2c   :  { %531 = vmatprep.subr.bf16.mxu0 %v3118_v34  ;;  %v3159_v12 = vld [vmem:[#allocation2 + $0xc0] ss:$12 sps:$4 sm:$0xff]   ;;  %v3166_v13 = vld [vmem:[#allocation2 + $0xdc] ss:$12 sps:$4 sm:$0xff]   ;;  %v3181_v24 = vld [vmem:[#allocation2 + $0x124] ss:$12 sps:$4 sm:$0xff]  }
  0x2d   :  { %v3171_v16 = vld [vmem:[#allocation2 + $0xf4] ss:$12 sps:$4 sm:$0xff]   ;;  %v3169_v19 = vld [vmem:[#allocation2 + $0xf0] ss:$12 sps:$4 sm:$0xff]   ;;  %v3173_v30 = vld [vmem:[#allocation2 + $0x38] ss:$12 sps:$4 sm:$0xff]  }
  0x2e   :  { %452 = vmatpush1.bf16.msra.mxu1 %v3075_v14  ;;  %v3133_v14 = vld [vmem:[%s4022_s1 + $0x168] ss:$28 sps:$4 sm:$0xff]   ;;  %v3134_v17 = vld [vmem:[%s4022_s1 + $0x1a0] ss:$28 sps:$4 sm:$0xff]   ;;  %vm2556_vm1 = vcmask 261120  }
  0x2f   :  { %453 = vmatprep.subr.bf16.mxu1 %v3076_v18  ;;  %532 = vmatpush1.bf16.msra.mxu0 %v3120_v37  ;;  %v3162_v18 = vld [vmem:[#allocation2 + $0xc8] ss:$12 sps:$4 sm:$0xff]   ;;  %v3167_v22 = vld [vmem:[#allocation2 + $0xe0] ss:$12 sps:$4 sm:$0xff]   ;;  %v3178_v33 = vld [vmem:[#allocation2 + $0x50] ss:$12 sps:$4 sm:$0xff]  }
  0x30   :  { %533 = vmatprep.subr.bf16.mxu0 %v3121_v38  ;;  %v3163_v21 = vld [vmem:[#allocation2 + $0x8] ss:$12 sps:$4 sm:$0xff]   ;;  %v3168_v26 = vld [vmem:[#allocation2 + $0x20] ss:$12 sps:$4 sm:$0xff]   ;;  %v3189_v38 = vld [vmem:[#allocation2 + $0x150] ss:$12 sps:$4 sm:$0xff]  }
  0x31   :  { %v3186_v29 = vld [vmem:[#allocation2 + $0x13c] ss:$12 sps:$4 sm:$0xff]   ;;  %v3191_v37 = vld [vmem:[#allocation2 + $0x154] ss:$12 sps:$4 sm:$0xff]  }
  0x32   :  { %454 = vmatpush1.bf16.msra.mxu1 %v3078_v20  ;;  %v3176_v20 = vld [vmem:[#allocation2 + $0x10c] ss:$12 sps:$4 sm:$0xff]   ;;  %v3182_v34 = vld [vmem:[#allocation2 + $0x128] ss:$12 sps:$4 sm:$0xff]  }
  0x33   :  { %480 = vmatprep.subr.bf16.mxu1 %v3081_v23  ;;  %534 = vmatpush1.bf16.msra.mxu0 %v3123_v41  ;;  %v3174_v23 = vld [vmem:[#allocation2 + $0x108] ss:$12 sps:$4 sm:$0xff]   ;;  %v3196_v41 = vld [vmem:[#allocation2 + $0x16c] ss:$12 sps:$4 sm:$0xff]  }
  0x34   :  { %535 = vmatprep.subr.bf16.mxu0 %v3124_v42  ;;  %v3194_v42 = vld [vmem:[#allocation2 + $0x168] ss:$12 sps:$4 sm:$0xff]  }
  0x35   :  { %472 = vmatmul.mubr.bf16.vlgmr.msra.gmra.mrb[0].mxu1 %v3634_v25 }
  0x36   :  { %481 = vmatpush1.bf16.msra.mxu1 %v3079_v27  ;;  %512 = vmatprep.mubr.bf16.mxu1 %v3492_v0  ;;  %v3172_v27 = vld [vmem:[#allocation2 + $0xf8] ss:$12 sps:$4 sm:$0xff]  }
  0x37   :  { %482 = vmatprep.subr.bf16.mxu1 %v3084_v28  ;;  %536 = vmatpush1.bf16.msra.mxu0 %v3126_v45  ;;  %v3179_v28 = vld [vmem:[#allocation2 + $0x120] ss:$12 sps:$4 sm:$0xff]   ;;  %v3201_v45 = vld [vmem:[#allocation2 + $0x184] ss:$12 sps:$4 sm:$0xff]  }
  0x38   :  { %1753 = vmatprep.subr.bf16.mxu0 %v3137_v46  ;;  %v3202_v46 = vld [vmem:[#allocation2 + $0x248] ss:$12 sps:$4 sm:$0xff]  }
  0x3a   :  { %483 = vmatpush1.bf16.msra.mxu1 %v3082_v31  ;;  %554 = vmatmul.mubr.bf16.vlgmr.msra.gmra.mrb[0].mxu0 %v3634_v25  ;;  %v3177_v31 = vld [vmem:[#allocation2 + $0x110] ss:$12 sps:$4 sm:$0xff]  }
  0x3b   :  { %484 = vmatprep.subr.bf16.mxu1 %v3087_v32  ;;  %1754 = vmatpush1.bf16.msra.mxu0 %v3135_v49  ;;  %v3184_v32 = vld [vmem:[#allocation2 + $0x138] ss:$12 sps:$4 sm:$0xff]  }
  0x3c   :  { %1755 = vmatprep.subr.bf16.mxu0 %v3140_v50  ;;  %v3758_v50 = vld [vmem:[%s4023_s2] sm:$0xff] }
  0x3e   :  { %485 = vmatpush1.bf16.msra.mxu1 %v3085_v35  ;;  %v3187_v35 = vld [vmem:[#allocation2 + $0x140] ss:$12 sps:$4 sm:$0xff]  }
  0x3f   :  { %486 = vmatprep.subr.bf16.mxu1 %v3090_v36  ;;  %1756 = vmatpush1.bf16.msra.mxu0 %v3138_v53  ;;  %v3188_v36 = vld [vmem:[#allocation2 + $0x80] ss:$12 sps:$4 sm:$0xff]  }
  0x40   :  { %1757 = vmatprep.subr.bf16.mxu0 %v3143_v54 }
  0x42   :  { %487 = vmatpush1.bf16.msra.mxu1 %v3088_v39  ;;  %v3192_v39 = vld [vmem:[#allocation2 + $0x158] ss:$12 sps:$4 sm:$0xff]  }
  0x43   :  { %488 = vmatprep.subr.bf16.mxu1 %v3093_v40  ;;  %1758 = vmatpush1.bf16.msra.mxu0 %v3141_v56  ;;  %v3193_v40 = vld [vmem:[#allocation2 + $0x98] ss:$12 sps:$4 sm:$0xff]  }
  0x44   :  { %1759 = vmatprep.subr.bf16.mxu0 %v3146_v57 }
  0x46   :  { %489 = vmatpush1.bf16.msra.mxu1 %v3091_v43  ;;  %v3197_v43 = vld [vmem:[#allocation2 + $0x170] ss:$12 sps:$4 sm:$0xff]  }
  0x47   :  { %490 = vmatprep.subr.bf16.mxu1 %v3096_v44  ;;  %1760 = vmatpush1.bf16.msra.mxu0 %v3144_v60  ;;  %v3198_v44 = vld [vmem:[#allocation2 + $0xb0] ss:$12 sps:$4 sm:$0xff]  }
  0x48   :  { %1761 = vmatprep.subr.bf16.mxu0 %v3149_v61 }
  0x4a   :  { %491 = vmatpush1.bf16.msra.mxu1 %v3094_v47  ;;  %v116_v47 = vlaneseq }
  0x4b   :  { %492 = vmatprep.subr.bf16.mxu1 %v3099_v48  ;;  %1762 = vmatpush1.bf16.msra.mxu0 %v3147_v1  ;;  %v3199_v1 = vld [vmem:[#allocation2 + $0x180] ss:$12 sps:$4 sm:$0xff]  }
  0x4c   :  { %1763 = vmatprep.subr.bf16.mxu0 %v3152_v2  ;;  %v3750_v48 = vshrl.u32 %v116_v47, 7  ;;  %v3203_v2 = vld [vmem:[#allocation2 + $0x188] ss:$12 sps:$4 sm:$0xff]  }
  0x4e   :  { %493 = vmatpush1.bf16.msra.mxu1 %v3097_v51  ;;  %v3753_v49 = vsub.s32 0, %v3750_v48  ;;  %v3761_v51 = vsub.s32 1, %v3750_v48 }
  0x4f   :  { %494 = vmatprep.subr.bf16.mxu1 %v3102_v52  ;;  %1764 = vmatpush1.bf16.msra.mxu0 %v3150_v3 }
  0x50   :  { %1765 = vmatprep.subr.bf16.mxu0 %v3155_v4  ;;  %v119_v52 = vrot.slane %v3758_v50, %v3753_v49  ;;  %v123_v53 = vrot.slane %v3758_v50, %v3761_v51  ;;  %v3206_v4 = vld [vmem:[#allocation2 + $0x19c] ss:$12 sps:$4 sm:$0xff]  }
  0x52   :  { %495 = vmatpush1.bf16.msra.mxu1 %v3100_v55 }
  0x53   :  { %2986 = vmatprep.subr.bf16.mxu1 %v3493_v59  ;;  %1766 = vmatpush1.bf16.msra.mxu0 %v3153_v6  ;;  %v3204_v6 = vld [vmem:[#allocation2 + $0x198] ss:$12 sps:$4 sm:$0xff]  }
  0x54   :  { %1767 = vmatprep.subr.bf16.mxu0 %v3158_v7  ;;  %v3208_v7 = vld [vmem:[#allocation2 + $0x1a0] ss:$12 sps:$4 sm:$0xff]  }
  0x55   :  { %513 = vmatmul.mubr.bf16.vlgmr.msra.gmra.mrb[4].mxu1 %v3634_v25 }
  0x56   :  { %2987 = vmatpush3.bf16.msra.mxu1 %v3127_v58  ;;  %3002 = vmatprep.mubr.msk.bf16.mxu1 %vm3494_vm0, %v3493_v59 }
  0x57   :  { %2988 = vmatprep.subr.bf16.mxu1 %v3493_v59  ;;  %1768 = vmatpush1.bf16.msra.mxu0 %v3156_v9  ;;  %v3212_v9 = vld [vmem:[#allocation2 + $0x278] ss:$12 sps:$4 sm:$0xff]  }
  0x58   :  { %1769 = vmatprep.subr.bf16.mxu0 %v3161_v10  ;;  %v3209_v10 = vld [vmem:[#allocation2 + $0x1b0] ss:$12 sps:$4 sm:$0xff]  }
  0x5a   :  { %2989 = vmatpush3.bf16.msra.mxu1 %v3128_v62 }
  0x5b   :  { %2990 = vmatprep.subr.bf16.mxu1 %v3493_v59  ;;  %1770 = vmatpush1.bf16.msra.mxu0 %v3159_v12  ;;  %v3216_v12 = vld [vmem:[#allocation2 + $0x1cc] ss:$12 sps:$4 sm:$0xff]  }
  0x5c   :  { %1771 = vmatprep.subr.bf16.mxu0 %v3166_v13  ;;  %v3217_v13 = vld [vmem:[#allocation2 + $0x290] ss:$12 sps:$4 sm:$0xff]  }
  0x5e   :  { %2991 = vmatpush3.bf16.msra.mxu1 %v3129_v63 }
  0x5f   :  { %2992 = vmatprep.subr.bf16.mxu1 %v3493_v59  ;;  %1772 = vmatpush1.bf16.msra.mxu0 %v3164_v15  ;;  %v3218_v15 = vld [vmem:[#allocation2 + $0x1d0] ss:$12 sps:$4 sm:$0xff]  }
  0x60   :  { %1773 = vmatprep.subr.bf16.mxu0 %v3171_v16  ;;  %v3221_v16 = vld [vmem:[#allocation2 + $0x1e4] ss:$12 sps:$4 sm:$0xff]  }
  0x62   :  { %2993 = vmatpush3.bf16.msra.mxu1 %v3130_v5  ;;  %v3207_v5 = vld [vmem:[#allocation2 + $0x260] ss:$12 sps:$4 sm:$0xff]  }
  0x63   :  { %2994 = vmatprep.subr.bf16.mxu1 %v3493_v59  ;;  %1774 = vmatpush1.bf16.msra.mxu0 %v3169_v19  ;;  %v3223_v19 = vld [vmem:[#allocation2 + $0x1e8] ss:$12 sps:$4 sm:$0xff]  }
  0x64   :  { %1775 = vmatprep.subr.bf16.mxu0 %v3176_v20 }
  0x66   :  { %2995 = vmatpush3.bf16.msra.mxu1 %v3131_v8  ;;  %v3211_v8 = vld [vmem:[#allocation2 + $0x1b4] ss:$12 sps:$4 sm:$0xff]  }
  0x67   :  { %2996 = vmatprep.subr.bf16.mxu1 %v3493_v59  ;;  %1776 = vmatpush1.bf16.msra.mxu0 %v3174_v23 }
  0x68   :  { %1777 = vmatprep.subr.bf16.mxu0 %v3181_v24  ;;  %v138_v24 = vsub.s32 5, %v3750_v48 }
  0x6a   :  { %2997 = vmatpush3.bf16.msra.mxu1 %v3132_v11  ;;  %v3213_v11 = vld [vmem:[#allocation2 + $0x1b8] ss:$12 sps:$4 sm:$0xff]  }
  0x6b   :  { %2998 = vmatprep.subr.bf16.mxu1 %v3493_v59  ;;  %1778 = vmatpush1.bf16.msra.mxu0 %v3179_v28 }
  0x6c   :  { %1779 = vmatprep.subr.bf16.mxu0 %v3186_v29  ;;  %v3224_v29 = vld [vmem:[#allocation2 + $0x1f8] ss:$12 sps:$4 sm:$0xff]  }
  0x6e   :  { %2999 = vmatpush3.bf16.msra.mxu1 %v3133_v14  ;;  %v3214_v14 = vld [vmem:[#allocation2 + $0x1c8] ss:$12 sps:$4 sm:$0xff]  }
  0x6f   :  { %3000 = vmatprep.subr.bf16.mxu1 %v3493_v59  ;;  %1780 = vmatpush1.bf16.msra.mxu0 %v3184_v32  ;;  %v3231_v32 = vld [vmem:[#allocation2 + $0x214] ss:$12 sps:$4 sm:$0xff]  }
  0x70   :  { %1781 = vmatprep.subr.bf16.mxu0 %v3191_v37  ;;  %v3233_v37 = vld [vmem:[#allocation2 + $0x218] ss:$12 sps:$4 sm:$0xff]  }
  0x72   :  { %3001 = vmatpush3.bf16.msra.mxu1 %v3134_v17  ;;  %v3222_v17 = vld [vmem:[#allocation2 + $0x2a8] ss:$12 sps:$4 sm:$0xff]  }
  0x73   :  { %2911 = vmatprep.subr.bf16.mxu1 %v3162_v18  ;;  %1782 = vmatpush1.bf16.msra.mxu0 %v3189_v38  ;;  %v3219_v18 = vld [vmem:[#allocation2 + $0x1e0] ss:$12 sps:$4 sm:$0xff]  }
  0x74   :  { %1783 = vmatprep.subr.bf16.mxu0 %v3196_v41  ;;  %v3236_v38 = vld [vmem:[#allocation2 + $0x22c] ss:$12 sps:$4 sm:$0xff]  }
  0x75   :  { %3003 = vmatmul.mubr.bf16.vlgmr.msra.gmra.mrb[8].mxu1 %v3634_v25  ;;  %v3183_v25 = vld [vmem:[#allocation2 + $0x68] ss:$12 sps:$4 sm:$0xff]  }
  0x76   :  { %2912 = vmatpush3.bf16.msra.mxu1 %v3163_v21  ;;  %v3226_v21 = vld [vmem:[#allocation2 + $0x1fc] ss:$12 sps:$4 sm:$0xff]  }
  0x77   :  { %2913 = vmatprep.subr.bf16.mxu1 %v3167_v22  ;;  %1784 = vmatpush1.bf16.msra.mxu0 %v3194_v42  ;;  %v3227_v22 = vld [vmem:[#allocation2 + $0x2c0] ss:$12 sps:$4 sm:$0xff]  }
  0x78   :  { %1794 = vmatprep.subr.bf16.mxu0 %v3201_v45  ;;  %v3234_v45 = vld [vmem:[#allocation2 + $0x228] ss:$12 sps:$4 sm:$0xff]  }
  0x7a   :  { %2914 = vmatpush3.bf16.msra.mxu1 %v3168_v26 }
  0x7b   :  { %2915 = vmatprep.subr.bf16.mxu1 %v3172_v27  ;;  %v126_v27 = vsub.s32 2, %v3750_v48 }
  0x7e   :  { %2916 = vmatpush3.bf16.msra.mxu1 %v3173_v30  ;;  %v3228_v30 = vld [vmem:[#allocation2 + $0x200] ss:$12 sps:$4 sm:$0xff]  }
  0x7f   :  { %2917 = vmatprep.subr.bf16.mxu1 %v3177_v31  ;;  %v130_v31 = vsub.s32 3, %v3750_v48 }
  0x82   :  { %2918 = vmatpush3.bf16.msra.mxu1 %v3178_v33  ;;  %v3232_v33 = vld [vmem:[#allocation2 + $0x2d8] ss:$12 sps:$4 sm:$0xff]  }
  0x83   :  { %2919 = vmatprep.subr.bf16.mxu1 %v3182_v34  ;;  %v139_v34 = vrot.slane %v3758_v50, %v138_v24  ;;  %v3271_v24 = vld [vmem:[#allocation2 + $0x2d4] ss:$12 sps:$4 sm:$0xff]  }
  0x86   :  { %2920 = vmatpush3.bf16.msra.mxu1 %v3183_v25  ;;  %v127_v25 = vrot.slane %v3758_v50, %v126_v27 }
  0x87   :  { %2921 = vmatprep.subr.bf16.mxu1 %v3187_v35  ;;  %v3229_v35 = vld [vmem:[#allocation2 + $0x210] ss:$12 sps:$4 sm:$0xff]  }
  0x8a   :  { %2922 = vmatpush3.bf16.msra.mxu1 %v3188_v36  ;;  %v131_v36 = vrot.slane %v3758_v50, %v130_v31  ;;  %v3276_v31 = vld [vmem:[#allocation2 + $0x2ec] ss:$12 sps:$4 sm:$0xff]  }
  0x8b   :  { %2923 = vmatprep.subr.bf16.mxu1 %v3192_v39  ;;  %v3237_v39 = vld [vmem:[#allocation2 + $0x2f0] ss:$12 sps:$4 sm:$0xff]  }
  0x8e   :  { %2924 = vmatpush3.bf16.msra.mxu1 %v3193_v40 }
  0x8f   :  { %2925 = vmatprep.subr.bf16.mxu1 %v3197_v43 }
  0x92   :  { %2926 = vmatpush3.bf16.msra.mxu1 %v3198_v44 }
  0x93   :  { %2933 = vmatprep.subr.bf16.mxu1 %v3202_v46  ;;  %v3238_v46 = vld [vmem:[#allocation2 + $0x230] ss:$12 sps:$4 sm:$0xff]  }
 0x108   :  { %v473_v54 = vpop.f32.mrb[0].mxu1 }
 0x109   :  { %v474_v55 = vadd.f32 %v473_v54, %v119_v52  ;;  %v475_v56 = vpop.f32.mrb[1].mxu1  ;;  %v3242_v54 = vld [vmem:[#allocation2 + $0x3c8] ss:$12 sps:$4 sm:$0xff]  }
 0x10a   :  { %v476_v57 = vadd.f32 %v475_v56, %v123_v53  ;;  %v477_v58 = vpop.f32.mrb[2].mxu1  ;;  %v3241_v53 = vld [vmem:[#allocation2 + $0x244] ss:$12 sps:$4 sm:$0xff]  }
 0x10b   :  { %v602_v60 = vmax.f32 %v474_v55, 0.0  ;;  %v478_v61 = vpop.f32.mrb[3].mxu1 }
 0x10c   :  { %v603_v62 = vmax.f32 %v476_v57, 0.0  ;;  %v3239_v61 = vld [vmem:[#allocation2 + $0x240] ss:$12 sps:$4 sm:$0xff]  }
 0x10d   :  { %v609_v3 = vpack.c.bf16 %v602_v60, %v602_v60  ;;  %v3767_v20 = vpop.f32.mrb[0].mxu0 }
 0x10e   :  { %v610_v63 = vpack.c.bf16 %v603_v62, %v603_v62  ;;  %v557_v23 = vpop.f32.mrb[1].mxu0  ;;  %v3243_v62 = vld [vmem:[#allocation2 + $0x308] ss:$12 sps:$4 sm:$0xff]  }
 0x10f   :  { %v559_v26 = vpop.f32.mrb[2].mxu0  ;;  %v558_v41 = vadd.f32 %v557_v23, %v139_v34  ;;  %v3268_v23 = vld [vmem:[#allocation2 + $0x380] ss:$12 sps:$4 sm:$0xff]  }
 0x110   :  { %1785 = vmatprep.mubr.bf16.mxu0 %v610_v63  ;;  %1949 = vmatprep.mubr.bf16.mxu1 %v610_v63  ;;  %v560_v28 = vpop.f32.mrb[3].mxu0  ;;  %v3246_v63 = vld [vmem:[#allocation2 + $0x25c] ss:$12 sps:$4 sm:$0xff]   ;;  %v3272_v26 = vld [vmem:[#allocation2 + $0x458] ss:$12 sps:$4 sm:$0xff]  }
 0x111   :  { %1786 = vmatmul.mubr.bf16.vlgmr.msra.gmra.mrb[4].mxu0 %v609_v3  ;;  %1950 = vmatmul.mubr.bf16.vlgmr.msra.gmra.mrb[12].mxu1 %v609_v3  ;;  %v607_v57 = vmax.f32 %v558_v41, 0.0  ;;  %v3244_v3 = vld [vmem:[#allocation2 + $0x258] ss:$12 sps:$4 sm:$0xff]   ;;  %v3282_v41 = vld [vmem:[#allocation2 + $0x488] ss:$12 sps:$4 sm:$0xff]  }
 0x112   :  { %1795 = vmatpush1.bf16.msra.mxu0 %v3199_v1  ;;  %2934 = vmatpush3.bf16.msra.mxu1 %v3203_v2  ;;  %v3247_v1 = vld [vmem:[#allocation2 + $0x3e0] ss:$12 sps:$4 sm:$0xff]  }
 0x113   :  { %1796 = vmatprep.subr.bf16.mxu0 %v3206_v4  ;;  %2935 = vmatprep.subr.bf16.mxu1 %v3207_v5  ;;  %v3779_v2 = vpack.c.bf16 %v607_v57, %v607_v57  ;;  %v3248_v4 = vld [vmem:[#allocation2 + $0x320] ss:$12 sps:$4 sm:$0xff]  }
 0x114   :  { %v3251_v5 = vld [vmem:[#allocation2 + $0x274] ss:$12 sps:$4 sm:$0xff]  }
 0x115   :  { %v3295_v57 = vld [vmem:[#allocation2 + $0x360] ss:$12 sps:$4 sm:$0xff]  }
 0x116   :  { %1797 = vmatpush1.bf16.msra.mxu0 %v3204_v6  ;;  %2936 = vmatpush3.bf16.msra.mxu1 %v3208_v7  ;;  %v3252_v6 = vld [vmem:[#allocation2 + $0x3f8] ss:$12 sps:$4 sm:$0xff]   ;;  %v3249_v7 = vld [vmem:[#allocation2 + $0x270] ss:$12 sps:$4 sm:$0xff]  }
 0x117   :  { %1798 = vmatprep.subr.bf16.mxu0 %v3211_v8  ;;  %2937 = vmatprep.subr.bf16.mxu1 %v3212_v9  ;;  %v3253_v8 = vld [vmem:[#allocation2 + $0x338] ss:$12 sps:$4 sm:$0xff]  }
 0x118   :  { %v3256_v9 = vld [vmem:[#allocation2 + $0x28c] ss:$12 sps:$4 sm:$0xff]  }
 0x11a   :  { %1799 = vmatpush1.bf16.msra.mxu0 %v3209_v10  ;;  %2938 = vmatpush3.bf16.msra.mxu1 %v3213_v11  ;;  %v3257_v10 = vld [vmem:[#allocation2 + $0x410] ss:$12 sps:$4 sm:$0xff]   ;;  %v3254_v11 = vld [vmem:[#allocation2 + $0x288] ss:$12 sps:$4 sm:$0xff]  }
 0x11b   :  { %1800 = vmatprep.subr.bf16.mxu0 %v3216_v12  ;;  %2939 = vmatprep.subr.bf16.mxu1 %v3217_v13  ;;  %v3258_v12 = vld [vmem:[#allocation2 + $0x350] ss:$12 sps:$4 sm:$0xff]  }
 0x11c   :  { %v3261_v13 = vld [vmem:[#allocation2 + $0x2a4] ss:$12 sps:$4 sm:$0xff]  }
 0x11e   :  { %1801 = vmatpush1.bf16.msra.mxu0 %v3214_v14  ;;  %2940 = vmatpush3.bf16.msra.mxu1 %v3218_v15  ;;  %v3262_v14 = vld [vmem:[#allocation2 + $0x428] ss:$12 sps:$4 sm:$0xff]   ;;  %v134_v15 = vsub.s32 4, %v3750_v48 }
 0x11f   :  { %1802 = vmatprep.subr.bf16.mxu0 %v3221_v16  ;;  %2941 = vmatprep.subr.bf16.mxu1 %v3222_v17  ;;  %v3259_v16 = vld [vmem:[#allocation2 + $0x2a0] ss:$12 sps:$4 sm:$0xff]   ;;  %v3263_v17 = vld [vmem:[#allocation2 + $0x368] ss:$12 sps:$4 sm:$0xff]  }
 0x122   :  { %1803 = vmatpush1.bf16.msra.mxu0 %v3219_v18  ;;  %2942 = vmatpush3.bf16.msra.mxu1 %v3223_v19  ;;  %v3266_v18 = vld [vmem:[#allocation2 + $0x2bc] ss:$12 sps:$4 sm:$0xff]   ;;  %v3267_v19 = vld [vmem:[#allocation2 + $0x440] ss:$12 sps:$4 sm:$0xff]  }
 0x123   :  { %1804 = vmatprep.subr.bf16.mxu0 %v3226_v21  ;;  %2943 = vmatprep.subr.bf16.mxu1 %v3227_v22  ;;  %v135_v21 = vrot.slane %v3758_v50, %v134_v15  ;;  %v3264_v22 = vld [vmem:[#allocation2 + $0x2b8] ss:$12 sps:$4 sm:$0xff]  }
 0x124   :  { %v3322_v15 = vld [vmem:[#allocation2 + $0x40c] ss:$12 sps:$4 sm:$0xff]  }
 0x125   :  { %v556_v28 = vadd.f32 %v3767_v20, %v135_v21  ;;  %v3331_v21 = vld [vmem:[#allocation2 + $0x454] ss:$12 sps:$4 sm:$0xff]  }
 0x126   :  { %1805 = vmatpush1.bf16.msra.mxu0 %v3224_v29  ;;  %2944 = vmatpush3.bf16.msra.mxu1 %v3228_v30  ;;  %v3269_v29 = vld [vmem:[#allocation2 + $0x2d0] ss:$12 sps:$4 sm:$0xff]   ;;  %v3273_v30 = vld [vmem:[#allocation2 + $0x398] ss:$12 sps:$4 sm:$0xff]  }
 0x127   :  { %1806 = vmatprep.subr.bf16.mxu0 %v3231_v32  ;;  %2945 = vmatprep.subr.bf16.mxu1 %v3232_v33  ;;  %v3277_v32 = vld [vmem:[#allocation2 + $0x470] ss:$12 sps:$4 sm:$0xff]   ;;  %v606_v34 = vmax.f32 %v556_v28, 0.0  ;;  %v3335_v28 = vld [vmem:[#allocation2 + $0x480] ss:$12 sps:$4 sm:$0xff]  }
 0x128   :  { %v514_v40 = vpop.f32.mrb[4].mxu1 }
 0x129   :  { %v515_v42 = vadd.f32 %v514_v40, %v127_v25  ;;  %v516_v43 = vpop.f32.mrb[5].mxu1  ;;  %v3279_v40 = vld [vmem:[#allocation2 + $0x300] ss:$12 sps:$4 sm:$0xff]  }
 0x12a   :  { %v517_v44 = vadd.f32 %v516_v43, %v131_v36  ;;  %1807 = vmatpush1.bf16.msra.mxu0 %v3229_v35  ;;  %2946 = vmatpush3.bf16.msra.mxu1 %v3233_v37  ;;  %v518_v47 = vpop.f32.mrb[6].mxu1  ;;  %v3274_v35 = vld [vmem:[#allocation2 + $0x2e8] ss:$12 sps:$4 sm:$0xff]   ;;  %v3278_v36 = vld [vmem:[#allocation2 + $0x3b0] ss:$12 sps:$4 sm:$0xff]  }
 0x12b   :  { %v604_v52 = vmax.f32 %v515_v42, 0.0  ;;  %1808 = vmatprep.subr.bf16.mxu0 %v3236_v38  ;;  %2947 = vmatprep.subr.bf16.mxu1 %v3237_v39  ;;  %v519_v55 = vpop.f32.mrb[7].mxu1  ;;  %v3281_v38 = vld [vmem:[#allocation2 + $0x304] ss:$12 sps:$4 sm:$0xff]   ;;  %v3786_v39 = vpack.c.bf16 %v606_v34, %v606_v34  ;;  %v3285_v42 = vld [vmem:[#allocation2 + $0x31c] ss:$12 sps:$4 sm:$0xff]  }
 0x12c   :  { %v605_v56 = vmax.f32 %v517_v44, 0.0  ;;  %v3283_v43 = vld [vmem:[#allocation2 + $0x318] ss:$12 sps:$4 sm:$0xff]   ;;  %v3286_v44 = vld [vmem:[#allocation2 + $0x4a0] ss:$12 sps:$4 sm:$0xff]  }
 0x12d   :  { %v3777_v58 = vpack.c.bf16 %v604_v52, %v604_v52  ;;  %v3290_v47 = vld [vmem:[#allocation2 + $0x4b8] ss:$12 sps:$4 sm:$0xff]   ;;  %v3344_v34 = vld [vmem:[#allocation2 + $0x4c8] ss:$12 sps:$4 sm:$0xff]  }
 0x12e   :  { %v612_v60 = vpack.c.bf16 %v605_v56, %v605_v56  ;;  %1809 = vmatpush1.bf16.msra.mxu0 %v3234_v45  ;;  %2948 = vmatpush3.bf16.msra.mxu1 %v3238_v46  ;;  %v3289_v45 = vld [vmem:[#allocation2 + $0x334] ss:$12 sps:$4 sm:$0xff]   ;;  %v3287_v46 = vld [vmem:[#allocation2 + $0x330] ss:$12 sps:$4 sm:$0xff]   ;;  %v3293_v52 = vld [vmem:[#allocation2 + $0x34c] ss:$12 sps:$4 sm:$0xff]  }
 0x12f   :  { %1810 = vmatprep.subr.bf16.mxu0 %v3241_v53  ;;  %2955 = vmatprep.subr.bf16.mxu1 %v3242_v54  ;;  %v3291_v53 = vld [vmem:[#allocation2 + $0x348] ss:$12 sps:$4 sm:$0xff]   ;;  %v3294_v54 = vld [vmem:[#allocation2 + $0x4d0] ss:$12 sps:$4 sm:$0xff]   ;;  %v142_v56 = vsub.s32 6, %v3750_v48 }
 0x130   :  { %1989 = vmatprep.mubr.bf16.mxu1 %v612_v60  ;;  %1826 = vmatprep.mubr.bf16.mxu0 %v612_v60  ;;  %v3297_v55 = vld [vmem:[#allocation2 + $0x364] ss:$12 sps:$4 sm:$0xff]   ;;  %v3301_v60 = vld [vmem:[#allocation2 + $0x37c] ss:$12 sps:$4 sm:$0xff]  }
 0x131   :  { %1990 = vmatmul.mubr.bf16.vlgmr.msra.gmra.mrb[16].mxu1 %v3777_v58  ;;  %v3406_v48 = vld [vmem:[%s4026_s5 + $0xf4] ss:$8 sps:$4 sm:$0xff]  }
 0x132   :  { %1811 = vmatpush1.bf16.msra.mxu0 %v3239_v61  ;;  %2956 = vmatpush3.bf16.msra.mxu1 %v3243_v62  ;;  %v143_v61 = vrot.slane %v3758_v50, %v142_v56  ;;  %v3299_v62 = vld [vmem:[#allocation2 + $0x378] ss:$12 sps:$4 sm:$0xff]   ;;  %v3307_v50 = vld [vmem:[#allocation2 + $0x3a8] ss:$12 sps:$4 sm:$0xff]  }
 0x133   :  { %1812 = vmatprep.subr.bf16.mxu0 %v3246_v63  ;;  %2957 = vmatprep.subr.bf16.mxu1 %v3247_v1  ;;  %v3302_v63 = vld [vmem:[#allocation2 + $0x500] ss:$12 sps:$4 sm:$0xff]   ;;  %v3374_v56 = vld [vmem:[%s4026_s5 + $0x50] ss:$8 sps:$4 sm:$0xff]  }
 0x134   :  { %2029 = vmatprep.mubr.bf16.mxu1 %v3779_v2  ;;  %v3305_v1 = vld [vmem:[#allocation2 + $0x394] ss:$12 sps:$4 sm:$0xff]  }
 0x136   :  { %1813 = vmatpush1.bf16.msra.mxu0 %v3244_v3  ;;  %2958 = vmatpush3.bf16.msra.mxu1 %v3248_v4  ;;  %v3303_v3 = vld [vmem:[#allocation2 + $0x390] ss:$12 sps:$4 sm:$0xff]   ;;  %v3306_v4 = vld [vmem:[#allocation2 + $0x518] ss:$12 sps:$4 sm:$0xff]  }
 0x137   :  { %1814 = vmatprep.subr.bf16.mxu0 %v3251_v5  ;;  %2959 = vmatprep.subr.bf16.mxu1 %v3252_v6  ;;  %v3309_v5 = vld [vmem:[#allocation2 + $0x3ac] ss:$12 sps:$4 sm:$0xff]  }
 0x13a   :  { %1815 = vmatpush1.bf16.msra.mxu0 %v3249_v7  ;;  %2960 = vmatpush3.bf16.msra.mxu1 %v3253_v8  ;;  %v3310_v7 = vld [vmem:[#allocation2 + $0x530] ss:$12 sps:$4 sm:$0xff]  }
 0x13b   :  { %1816 = vmatprep.subr.bf16.mxu0 %v3256_v9  ;;  %2961 = vmatprep.subr.bf16.mxu1 %v3257_v10  ;;  %v3313_v8 = vld [vmem:[#allocation2 + $0x3c4] ss:$12 sps:$4 sm:$0xff]   ;;  %v3311_v10 = vld [vmem:[#allocation2 + $0x3c0] ss:$12 sps:$4 sm:$0xff]  }
 0x13e   :  { %1817 = vmatpush1.bf16.msra.mxu0 %v3254_v11  ;;  %2962 = vmatpush3.bf16.msra.mxu1 %v3258_v12  ;;  %v3316_v11 = vld [vmem:[#allocation2 + $0x3dc] ss:$12 sps:$4 sm:$0xff]   ;;  %v3314_v12 = vld [vmem:[#allocation2 + $0x3d8] ss:$12 sps:$4 sm:$0xff]  }
 0x13f   :  { %1818 = vmatprep.subr.bf16.mxu0 %v3261_v13  ;;  %2963 = vmatprep.subr.bf16.mxu1 %v3262_v14  ;;  %v3319_v13 = vld [vmem:[#allocation2 + $0x3f4] ss:$12 sps:$4 sm:$0xff]   ;;  %v3317_v14 = vld [vmem:[#allocation2 + $0x3f0] ss:$12 sps:$4 sm:$0xff]  }
 0x142   :  { %1819 = vmatpush1.bf16.msra.mxu0 %v3259_v16  ;;  %2964 = vmatpush3.bf16.msra.mxu1 %v3263_v17  ;;  %v3325_v16 = vld [vmem:[#allocation2 + $0x424] ss:$12 sps:$4 sm:$0xff]   ;;  %v3323_v17 = vld [vmem:[#allocation2 + $0x420] ss:$12 sps:$4 sm:$0xff]  }
 0x143   :  { %1820 = vmatprep.subr.bf16.mxu0 %v3266_v18  ;;  %2965 = vmatprep.subr.bf16.mxu1 %v3267_v19  ;;  %v3328_v18 = vld [vmem:[#allocation2 + $0x43c] ss:$12 sps:$4 sm:$0xff]   ;;  %v3326_v19 = vld [vmem:[#allocation2 + $0x438] ss:$12 sps:$4 sm:$0xff]  }
 0x146   :  { %1821 = vmatpush1.bf16.msra.mxu0 %v3264_v22  ;;  %2966 = vmatpush3.bf16.msra.mxu1 %v3268_v23  ;;  %v3329_v22 = vld [vmem:[#allocation2 + $0x450] ss:$12 sps:$4 sm:$0xff]   ;;  %v3334_v23 = vld [vmem:[#allocation2 + $0x46c] ss:$12 sps:$4 sm:$0xff]  }
 0x147   :  { %1822 = vmatprep.subr.bf16.mxu0 %v3271_v24  ;;  %2967 = vmatprep.subr.bf16.mxu1 %v3272_v26  ;;  %v3332_v24 = vld [vmem:[#allocation2 + $0x468] ss:$12 sps:$4 sm:$0xff]   ;;  %v3337_v26 = vld [vmem:[#allocation2 + $0x484] ss:$12 sps:$4 sm:$0xff]  }
 0x148   :  { %v596_v33 = vpop.f32.mrb[8].mxu1 }
 0x149   :  { %v3004_v25 = vpop.f32.mrb[9].mxu1 }
 0x14a   :  { %1823 = vmatpush1.bf16.msra.mxu0 %v3269_v29  ;;  %2968 = vmatpush3.bf16.msra.mxu1 %v3273_v30  ;;  %v599_v37 = vpop.f32.mrb[10].mxu1  ;;  %v3340_v29 = vld [vmem:[#allocation2 + $0x49c] ss:$12 sps:$4 sm:$0xff]   ;;  %v3338_v30 = vld [vmem:[#allocation2 + $0x498] ss:$12 sps:$4 sm:$0xff]  }
 0x14b   :  { %1824 = vmatprep.subr.bf16.mxu0 %v3276_v31  ;;  %2969 = vmatprep.subr.bf16.mxu1 %v3277_v32  ;;  %v3005_v20 = vpop.f32.mrb[11].mxu1  ;;  %v3343_v31 = vld [vmem:[#allocation2 + $0x4b4] ss:$12 sps:$4 sm:$0xff]   ;;  %v3341_v32 = vld [vmem:[#allocation2 + $0x4b0] ss:$12 sps:$4 sm:$0xff]  }
 0x14c   :  { %v3349_v25 = vld [vmem:[#allocation2 + $0x4e4] ss:$12 sps:$4 sm:$0xff]  }
 0x14d   :  { %v3350_v37 = vld [vmem:[#allocation2 + $0x4f8] ss:$12 sps:$4 sm:$0xff]   ;;  %v3353_v20 = vld [vmem:[#allocation2 + $0x510] ss:$12 sps:$4 sm:$0xff]  }
 0x14e   :  { %1825 = vmatpush1.bf16.msra.mxu0 %v3274_v35  ;;  %2970 = vmatpush3.bf16.msra.mxu1 %v3278_v36  ;;  %v3347_v35 = vld [vmem:[#allocation2 + $0x4e0] ss:$12 sps:$4 sm:$0xff]   ;;  %v3352_v36 = vld [vmem:[#allocation2 + $0x4fc] ss:$12 sps:$4 sm:$0xff]  }
 0x14f   :  { %1835 = vmatprep.subr.bf16.mxu0 %v3281_v38  ;;  %3006 = vmatprep.subr.bf16.mxu1 %v3493_v59  ;;  %v3355_v38 = vld [vmem:[#allocation2 + $0x514] ss:$12 sps:$4 sm:$0xff]  }
 0x151   :  { %1827 = vmatmul.mubr.bf16.vlgmr.msra.gmra.mrb[4].mxu0 %v3777_v58  ;;  %2030 = vmatmul.mubr.bf16.vlgmr.msra.gmra.mrb[20].mxu1 %v3786_v39  ;;  %v3298_v58 = vld [vmem:[#allocation2 + $0x4e8] ss:$12 sps:$4 sm:$0xff]  }
 0x152   :  { %1836 = vmatpush1.bf16.msra.mxu0 %v3279_v40  ;;  %3007 = vmatpush3.bf16.msra.mxu1 %v3282_v41  ;;  %v3356_v40 = vld [vmem:[#allocation2 + $0x528] ss:$12 sps:$4 sm:$0xff]  }
 0x153   :  { %1837 = vmatprep.subr.bf16.mxu0 %v3285_v42  ;;  %3008 = vmatprep.subr.bf16.mxu1 %v3493_v59  ;;  %v3359_v41 = vld [vmem:[%s4026_s5] ss:$8 sps:$4 sm:$0xff]   ;;  %v3361_v42 = vld [vmem:[%s4026_s5 + $0x4] ss:$8 sps:$4 sm:$0xff]  }
 0x154   :  { %3022 = vmatprep.mubr.msk.bf16.mxu1 %vm3494_vm0, %v3493_v59  ;;  %1867 = vmatprep.mubr.bf16.mxu0 %v3779_v2  ;;  %v597_v2 = vadd.f32 %v596_v33, %v143_v61  ;;  %v3346_v33 = vld [vmem:[#allocation2 + $0x4cc] ss:$12 sps:$4 sm:$0xff]  }
 0x156   :  { %1838 = vmatpush1.bf16.msra.mxu0 %v3283_v43  ;;  %3009 = vmatpush3.bf16.msra.mxu1 %v3286_v44  ;;  %v608_v6 = vmax.f32 %v597_v2, 0.0  ;;  %v3364_v43 = vld [vmem:[%s4026_s5 + $0x14] ss:$8 sps:$4 sm:$0xff]   ;;  %v3362_v44 = vld [vmem:[%s4026_s5 + $0x10] ss:$8 sps:$4 sm:$0xff]  }
 0x157   :  { %1839 = vmatprep.subr.bf16.mxu0 %v3289_v45  ;;  %3010 = vmatprep.subr.bf16.mxu1 %v3493_v59  ;;  %v3367_v45 = vld [vmem:[%s4026_s5 + $0x24] ss:$8 sps:$4 sm:$0xff]  }
 0x158   :  { %v3803_v9 = vpack.c.bf16 %v608_v6, %v608_v6  ;;  %v3388_v6 = vld [vmem:[%s4026_s5 + $0x94] ss:$8 sps:$4 sm:$0xff]  }
 0x15a   :  { %1840 = vmatpush1.bf16.msra.mxu0 %v3287_v46  ;;  %3011 = vmatpush3.bf16.msra.mxu1 %v3290_v47  ;;  %v3365_v46 = vld [vmem:[%s4026_s5 + $0x20] ss:$8 sps:$4 sm:$0xff]   ;;  %v3370_v47 = vld [vmem:[%s4026_s5 + $0x34] ss:$8 sps:$4 sm:$0xff]  }
 0x15b   :  { %1841 = vmatprep.subr.bf16.mxu0 %v3293_v52  ;;  %3012 = vmatprep.subr.bf16.mxu1 %v3493_v59  ;;  %v3368_v52 = vld [vmem:[%s4026_s5 + $0x30] ss:$8 sps:$4 sm:$0xff]  }
 0x15e   :  { %1842 = vmatpush1.bf16.msra.mxu0 %v3291_v53  ;;  %3013 = vmatpush3.bf16.msra.mxu1 %v3294_v54  ;;  %v3373_v53 = vld [vmem:[%s4026_s5 + $0x44] ss:$8 sps:$4 sm:$0xff]   ;;  %v3371_v54 = vld [vmem:[%s4026_s5 + $0x40] ss:$8 sps:$4 sm:$0xff]  }
 0x15f   :  { %1843 = vmatprep.subr.bf16.mxu0 %v3297_v55  ;;  %3014 = vmatprep.subr.bf16.mxu1 %v3493_v59  ;;  %v3376_v55 = vld [vmem:[%s4026_s5 + $0x54] ss:$8 sps:$4 sm:$0xff]  }
 0x162   :  { %1844 = vmatpush1.bf16.msra.mxu0 %v3295_v57  ;;  %3015 = vmatpush3.bf16.msra.mxu1 %v3298_v58  ;;  %v3379_v57 = vld [vmem:[%s4026_s5 + $0x64] ss:$8 sps:$4 sm:$0xff]   ;;  %v3377_v58 = vld [vmem:[%s4026_s5 + $0x60] ss:$8 sps:$4 sm:$0xff]  }
 0x163   :  { %1845 = vmatprep.subr.bf16.mxu0 %v3301_v60  ;;  %3016 = vmatprep.subr.bf16.mxu1 %v3493_v59  ;;  %v3382_v60 = vld [vmem:[%s4026_s5 + $0x74] ss:$8 sps:$4 sm:$0xff]  }
 0x166   :  { %1846 = vmatpush1.bf16.msra.mxu0 %v3299_v62  ;;  %3017 = vmatpush3.bf16.msra.mxu1 %v3302_v63  ;;  %v3380_v62 = vld [vmem:[%s4026_s5 + $0x70] ss:$8 sps:$4 sm:$0xff]  }
 0x167   :  { %1847 = vmatprep.subr.bf16.mxu0 %v3305_v1  ;;  %3018 = vmatprep.subr.bf16.mxu1 %v3493_v59  ;;  %v3385_v1 = vld [vmem:[%s4026_s5 + $0x84] ss:$8 sps:$4 sm:$0xff]  }
 0x16a   :  { %1848 = vmatpush1.bf16.msra.mxu0 %v3303_v3  ;;  %3019 = vmatpush3.bf16.msra.mxu1 %v3306_v4 }
 0x16b   :  { %1849 = vmatprep.subr.bf16.mxu0 %v3309_v5  ;;  %3020 = vmatprep.subr.bf16.mxu1 %v3493_v59  ;;  %v3320_v59 = vld [vmem:[#allocation2 + $0x408] ss:$12 sps:$4 sm:$0xff]  }
 0x16c   :  { %v3383_v5 = vld [vmem:[%s4026_s5 + $0x80] ss:$8 sps:$4 sm:$0xff]  }
 0x16e   :  { %1850 = vmatpush1.bf16.msra.mxu0 %v3307_v50  ;;  %3021 = vmatpush3.bf16.msra.mxu1 %v3310_v7  ;;  %v3386_v50 = vld [vmem:[%s4026_s5 + $0x90] ss:$8 sps:$4 sm:$0xff]   ;;  %v3391_v7 = vld [vmem:[%s4026_s5 + $0xa4] ss:$8 sps:$4 sm:$0xff]  }
 0x16f   :  { %1851 = vmatprep.subr.bf16.mxu0 %v3313_v8  ;;  %2383 = vmatprep.subr.bf16.mxu1 %v3361_v42  ;;  %v3389_v8 = vld [vmem:[%s4026_s5 + $0xa0] ss:$8 sps:$4 sm:$0xff]  }
 0x171   :  { %3023 = vmatmul.mubr.bf16.vlgmr.msra.gmra.mrb[24].mxu1 %v3803_v9 }
 0x172   :  { %1852 = vmatpush1.bf16.msra.mxu0 %v3311_v10  ;;  %2384 = vmatpush1.bf16.msra.mxu1 %v3359_v41  ;;  %v3392_v10 = vld [vmem:[%s4026_s5 + $0xb0] ss:$8 sps:$4 sm:$0xff]  }
 0x173   :  { %1853 = vmatprep.subr.bf16.mxu0 %v3316_v11  ;;  %2385 = vmatprep.subr.bf16.mxu1 %v3364_v43  ;;  %v3397_v11 = vld [vmem:[%s4026_s5 + $0xc4] ss:$8 sps:$4 sm:$0xff]  }
 0x176   :  { %1854 = vmatpush1.bf16.msra.mxu0 %v3314_v12  ;;  %2386 = vmatpush1.bf16.msra.mxu1 %v3362_v44  ;;  %v3395_v12 = vld [vmem:[%s4026_s5 + $0xc0] ss:$8 sps:$4 sm:$0xff]  }
 0x177   :  { %1855 = vmatprep.subr.bf16.mxu0 %v3319_v13  ;;  %2387 = vmatprep.subr.bf16.mxu1 %v3367_v45  ;;  %v3400_v13 = vld [vmem:[%s4026_s5 + $0xd4] ss:$8 sps:$4 sm:$0xff]  }
 0x178   :  { %v3438_v45 = vld [vmem:[%s4028_s7 + $0x38] sm:$0xff]  }
 0x17a   :  { %1856 = vmatpush1.bf16.msra.mxu0 %v3317_v14  ;;  %2388 = vmatpush1.bf16.msra.mxu1 %v3365_v46  ;;  %v3398_v14 = vld [vmem:[%s4026_s5 + $0xd0] ss:$8 sps:$4 sm:$0xff]  }
 0x17b   :  { %1857 = vmatprep.subr.bf16.mxu0 %v3322_v15  ;;  %2389 = vmatprep.subr.bf16.mxu1 %v3370_v47  ;;  %v840_v15 = vld [vmem:[%s4025_s4] sm:$0x7] }
 0x17c   :  { %v845_v46 = vrot.slane %v840_v15, %v3753_v49  ;;  %v849_v47 = vrot.slane %v840_v15, %v3761_v51 }
 0x17e   :  { %1858 = vmatpush1.bf16.msra.mxu0 %v3320_v59  ;;  %2390 = vmatpush1.bf16.msra.mxu1 %v3368_v52  ;;  %v853_v59 = vrot.slane %v840_v15, %v126_v27 }
 0x17f   :  { %1859 = vmatprep.subr.bf16.mxu0 %v3325_v16  ;;  %2391 = vmatprep.subr.bf16.mxu1 %v3373_v53  ;;  %v3403_v16 = vld [vmem:[%s4026_s5 + $0xe4] ss:$8 sps:$4 sm:$0xff]  }
 0x182   :  { %1860 = vmatpush1.bf16.msra.mxu0 %v3323_v17  ;;  %2392 = vmatpush1.bf16.msra.mxu1 %v3371_v54  ;;  %v3401_v17 = vld [vmem:[%s4026_s5 + $0xe0] ss:$8 sps:$4 sm:$0xff]  }
 0x183   :  { %1861 = vmatprep.subr.bf16.mxu0 %v3328_v18  ;;  %2393 = vmatprep.subr.bf16.mxu1 %v3376_v55 }
 0x186   :  { %1862 = vmatpush1.bf16.msra.mxu0 %v3326_v19  ;;  %2394 = vmatpush1.bf16.msra.mxu1 %v3374_v56 }
 0x187   :  { %1863 = vmatprep.subr.bf16.mxu0 %v3331_v21  ;;  %2395 = vmatprep.subr.bf16.mxu1 %v3379_v57 }
 0x18a   :  { %1864 = vmatpush1.bf16.msra.mxu0 %v3329_v22  ;;  %2396 = vmatpush1.bf16.msra.mxu1 %v3377_v58 }
 0x18b   :  { %1865 = vmatprep.subr.bf16.mxu0 %v3334_v23  ;;  %2397 = vmatprep.subr.bf16.mxu1 %v3382_v60 }
 0x18e   :  { %1866 = vmatpush1.bf16.msra.mxu0 %v3332_v24  ;;  %2398 = vmatpush1.bf16.msra.mxu1 %v3380_v62  ;;  %v3404_v24 = vld [vmem:[%s4026_s5 + $0xf0] ss:$8 sps:$4 sm:$0xff]   ;;  %v3407_v62 = vld [vmem:[%s4026_s5 + $0x100] ss:$8 sps:$4 sm:$0xff]  }
 0x18f   :  { %1876 = vmatprep.subr.bf16.mxu0 %v3337_v26  ;;  %2399 = vmatprep.subr.bf16.mxu1 %v3385_v1  ;;  %v3412_v1 = vld [vmem:[%s4026_s5 + $0x114] ss:$8 sps:$4 sm:$0xff]  }
 0x191   :  { %1868 = vmatmul.mubr.bf16.vlgmr.msra.gmra.mrb[4].mxu0 %v3786_v39  ;;  %v3358_v39 = vld [vmem:[#allocation2 + $0x52c] ss:$12 sps:$4 sm:$0xff]  }
 0x192   :  { %1877 = vmatpush1.bf16.msra.mxu0 %v3335_v28  ;;  %1908 = vmatprep.mubr.bf16.mxu0 %v3492_v0  ;;  %v3409_v28 = vld [vmem:[%s4026_s5 + $0x104] ss:$8 sps:$4 sm:$0xff]  }
 0x193   :  { %1878 = vmatprep.subr.bf16.mxu0 %v3340_v29  ;;  %2400 = vmatpush1.bf16.msra.mxu1 %v3383_v5  ;;  %v3418_v5 = vld [vmem:[%s4026_s5 + $0x134] ss:$8 sps:$4 sm:$0xff]  }
 0x194   :  { %2401 = vmatprep.subr.bf16.mxu1 %v3388_v6  ;;  %v3416_v6 = vld [vmem:[%s4026_s5 + $0x130] ss:$8 sps:$4 sm:$0xff]  }
 0x196   :  { %1879 = vmatpush1.bf16.msra.mxu0 %v3338_v30 }
 0x197   :  { %1880 = vmatprep.subr.bf16.mxu0 %v3343_v31  ;;  %2402 = vmatpush1.bf16.msra.mxu1 %v3386_v50  ;;  %v3421_v50 = vld [vmem:[%s4026_s5 + $0x144] ss:$8 sps:$4 sm:$0xff]  }
 0x198   :  { %2403 = vmatprep.subr.bf16.mxu1 %v3391_v7  ;;  %v3419_v7 = vld [vmem:[%s4026_s5 + $0x140] ss:$8 sps:$4 sm:$0xff]  }
 0x19a   :  { %1881 = vmatpush1.bf16.msra.mxu0 %v3341_v32 }
 0x19b   :  { %1882 = vmatprep.subr.bf16.mxu0 %v3346_v33  ;;  %2404 = vmatpush1.bf16.msra.mxu1 %v3389_v8  ;;  %v3424_v8 = vld [vmem:[%s4026_s5 + $0x154] ss:$8 sps:$4 sm:$0xff]  }
 0x19e   :  { %1883 = vmatpush1.bf16.msra.mxu0 %v3344_v34 }
 0x19f   :  { %1884 = vmatprep.subr.bf16.mxu0 %v3349_v25  ;;  %v3431_v25 = vld [vmem:[%s4028_s7] sm:$0xff]  }
 0x1a2   :  { %1885 = vmatpush1.bf16.msra.mxu0 %v3347_v35  ;;  %v3432_v35 = vld [vmem:[%s4028_s7 + $0x8] sm:$0xff]  }
 0x1a3   :  { %1886 = vmatprep.subr.bf16.mxu0 %v3352_v36  ;;  %v3433_v36 = vld [vmem:[%s4028_s7 + $0x10] sm:$0xff]  }
 0x1a6   :  { %1887 = vmatpush1.bf16.msra.mxu0 %v3350_v37  ;;  %v3434_v37 = vld [vmem:[%s4028_s7 + $0x18] sm:$0xff]  }
 0x1a7   :  { %1888 = vmatprep.subr.bf16.mxu0 %v3355_v38  ;;  %v3435_v38 = vld [vmem:[%s4028_s7 + $0x20] sm:$0xff]  }
 0x1aa   :  { %1889 = vmatpush1.bf16.msra.mxu0 %v3353_v20  ;;  %v3436_v20 = vld [vmem:[%s4028_s7 + $0x28] sm:$0xff]  }
 0x1ab   :  { %1890 = vmatprep.subr.bf16.mxu0 %v3358_v39  ;;  %v3437_v39 = vld [vmem:[%s4028_s7 + $0x30] sm:$0xff]  }
 0x1ae   :  { %1891 = vmatpush1.bf16.msra.mxu0 %v3356_v40 }
 0x1af   :  { %2560 = vmatprep.subr.bf16.mxu0 %v3492_v0 }
 0x1b1   :  { %1909 = vmatmul.mubr.bf16.vlgmr.msra.gmra.mrb[4].mxu0 %v3803_v9  ;;  %v3394_v9 = vld [vmem:[%s4026_s5 + $0xb4] ss:$8 sps:$4 sm:$0xff]  }
 0x1b2   :  { %2405 = vmatprep.subr.bf16.mxu1 %v3394_v9  ;;  %2561 = vmatpush1.bf16.msra.mxu0 %v3431_v25  ;;  %v3422_v9 = vld [vmem:[%s4026_s5 + $0x150] ss:$8 sps:$4 sm:$0xff]  }
 0x1b3   :  { %2406 = vmatpush1.bf16.msra.mxu1 %v3392_v10  ;;  %2562 = vmatprep.subr.bf16.mxu0 %v3492_v0  ;;  %v3427_v10 = vld [vmem:[%s4026_s5 + $0x164] ss:$8 sps:$4 sm:$0xff]  }
 0x1b4   :  { %2407 = vmatprep.subr.bf16.mxu1 %v3397_v11  ;;  %v3425_v11 = vld [vmem:[%s4026_s5 + $0x160] ss:$8 sps:$4 sm:$0xff]  }
 0x1b6   :  { %2563 = vmatpush1.bf16.msra.mxu0 %v3432_v35 }
 0x1b7   :  { %2408 = vmatpush1.bf16.msra.mxu1 %v3395_v12  ;;  %2564 = vmatprep.subr.bf16.mxu0 %v3492_v0  ;;  %v3430_v12 = vld [vmem:[%s4026_s5 + $0x174] ss:$8 sps:$4 sm:$0xff]  }
 0x1b8   :  { %2409 = vmatprep.subr.bf16.mxu1 %v3400_v13  ;;  %v3428_v13 = vld [vmem:[%s4026_s5 + $0x170] ss:$8 sps:$4 sm:$0xff]  }
 0x1ba   :  { %2565 = vmatpush1.bf16.msra.mxu0 %v3433_v36 }
 0x1bb   :  { %2410 = vmatpush1.bf16.msra.mxu1 %v3398_v14  ;;  %2566 = vmatprep.subr.bf16.mxu0 %v3492_v0 }
 0x1bc   :  { %2411 = vmatprep.subr.bf16.mxu1 %v3403_v16  ;;  %v3440_v16 = vld [vmem:[%s4028_s7 + $0x48] sm:$0xff]  }
 0x1be   :  { %2567 = vmatpush1.bf16.msra.mxu0 %v3434_v37 }
 0x1bf   :  { %2412 = vmatpush1.bf16.msra.mxu1 %v3401_v17  ;;  %2568 = vmatprep.subr.bf16.mxu0 %v3492_v0  ;;  %v2131_v17 = vld [vmem:[%s4027_s6] sm:$0x3] }
 0x1c0   :  { %2413 = vmatprep.subr.bf16.mxu1 %v3406_v48 }
 0x1c2   :  { %2569 = vmatpush1.bf16.msra.mxu0 %v3435_v38 }
 0x1c3   :  { %2414 = vmatpush1.bf16.msra.mxu1 %v3404_v24  ;;  %2570 = vmatprep.subr.bf16.mxu0 %v3492_v0 }
 0x1c4   :  { %2424 = vmatprep.subr.bf16.mxu1 %v3409_v28 }
 0x1c6   :  { %2571 = vmatpush1.bf16.msra.mxu0 %v3436_v20 }
 0x1c7   :  { %2572 = vmatprep.subr.bf16.mxu0 %v3492_v0 }
 0x1ca   :  { %2573 = vmatpush1.bf16.msra.mxu0 %v3437_v39 }
 0x1cb   :  { %2574 = vmatprep.subr.bf16.mxu0 %v3492_v0 }
 0x1ce   :  { %2575 = vmatpush1.bf16.msra.mxu0 %v3438_v45 }
 0x1cf   :  { %2576 = vmatprep.subr.bf16.mxu0 %v3492_v0 }
 0x1e4   :  { %v2927_v61 = vpop.f32.mrb[12].mxu1 }
 0x1e5   :  { %v2928_v63 = vpop.f32.mrb[13].mxu1 }
 0x1e6   :  { %v2929_v2 = vadd.f32 %v2928_v63, %v2927_v61  ;;  %v2930_v3 = vpop.f32.mrb[14].mxu1 }
 0x1e7   :  { %v2931_v4 = vpop.f32.mrb[15].mxu1  ;;  %v3415_v3 = vld [vmem:[%s4026_s5 + $0x124] ss:$8 sps:$4 sm:$0xff]  }
 0x1e8   :  { %v1952_v21 = vadd.f32 %v2929_v2, %v853_v59  ;;  %v3410_v2 = vld [vmem:[%s4026_s5 + $0x110] ss:$8 sps:$4 sm:$0xff]   ;;  %v3413_v4 = vld [vmem:[%s4026_s5 + $0x120] ss:$8 sps:$4 sm:$0xff]  }
 0x1e9   :  { %v3439_v59 = vld [vmem:[%s4028_s7 + $0x40] sm:$0xff]  }
 0x1ea   :  { %2577 = vmatpush1.bf16.msra.mxu0 %v3439_v59 }
 0x1eb   :  { %2578 = vmatprep.subr.bf16.mxu0 %v3492_v0 }
 0x1ee   :  { %2579 = vmatpush1.bf16.msra.mxu0 %v3440_v16 }
 0x204   :  { %v2949_v18 = vpop.f32.mrb[16].mxu1 }
 0x205   :  { %v2950_v19 = vpop.f32.mrb[17].mxu1 }
 0x206   :  { %v2951_v22 = vadd.f32 %v2950_v19, %v2949_v18  ;;  %v2952_v23 = vpop.f32.mrb[18].mxu1  ;;  %v2136_v18 = vrot.slane %v2131_v17, %v3753_v49  ;;  %v2140_v19 = vrot.slane %v2131_v17, %v3761_v51 }
 0x207   :  { %v2953_v27 = vpop.f32.mrb[19].mxu1 }
 0x208   :  { %v1992_v26 = vadd.f32 %v2951_v22, %v1952_v21 }
 0x224   :  { %v2971_v29 = vpop.f32.mrb[20].mxu1 }
 0x225   :  { %v2972_v30 = vpop.f32.mrb[21].mxu1 }
 0x226   :  { %v2973_v31 = vadd.f32 %v2972_v30, %v2971_v29  ;;  %v2974_v32 = vpop.f32.mrb[22].mxu1  ;;  %v2890_v30 = vld [vmem:[%s4029_s8] ss:$0 sm:$0xff] }
 0x227   :  { %v2975_v33 = vpop.f32.mrb[23].mxu1 }
 0x228   :  { %v2032_v34 = vadd.f32 %v2973_v31, %v1992_v26 }
 0x244   :  { %v2071_v40 = vpop.f32.mrb[24].mxu1 }
 0x245   :  { %v2072_v41 = vadd.f32 %v2071_v40, %v2032_v34  ;;  %v3024_v42 = vpop.f32.mrb[25].mxu1 }
 0x246   :  { %v2074_v43 = vpop.f32.mrb[26].mxu1 }
 0x247   :  { %v3025_v44 = vpop.f32.mrb[27].mxu1  ;;  %v2079_v14 = vmax.f32 %v2072_v41, 0.0 }
 0x249   :  { %v2082_v15 = vpack.c.bf16 %v2079_v14, %v2079_v14 }
 0x284   :  { %v1910_v52 = vpop.f32.mrb[4].mxu0 }
 0x285   :  { %v3026_v53 = vadd.f32 %v1910_v52, %v845_v46  ;;  %v1912_v54 = vpop.f32.mrb[5].mxu0 }
 0x286   :  { %v3027_v55 = vadd.f32 %v1912_v54, %v849_v47  ;;  %v1914_v56 = vpop.f32.mrb[6].mxu0 }
 0x287   :  { %v2077_v57 = vmax.f32 %v3026_v53, 0.0  ;;  %v1915_v58 = vpop.f32.mrb[7].mxu0 }
 0x288   :  { %v2078_v60 = vmax.f32 %v3027_v55, 0.0 }
 0x289   :  { %v2080_v63 = vpack.c.bf16 %v2077_v57, %v2077_v57 }
 0x28a   :  { %v2081_v61 = vpack.c.bf16 %v2078_v60, %v2078_v60 }
 0x28c   :  { %2415 = vmatprep.mubr.bf16.mxu1 %v2081_v61 }
 0x28d   :  { %2416 = vmatmul.mubr.bf16.vlgmr.msra.gmra.mrb[28].mxu1 %v2080_v63 }
 0x28e   :  { %2425 = vmatpush1.bf16.msra.mxu1 %v3407_v62  ;;  %2456 = vmatprep.mubr.bf16.mxu1 %v3492_v0 }
 0x28f   :  { %2426 = vmatprep.subr.bf16.mxu1 %v3412_v1 }
 0x292   :  { %2427 = vmatpush1.bf16.msra.mxu1 %v3410_v2 }
 0x293   :  { %2428 = vmatprep.subr.bf16.mxu1 %v3415_v3 }
 0x296   :  { %2429 = vmatpush1.bf16.msra.mxu1 %v3413_v4 }
 0x297   :  { %2430 = vmatprep.subr.bf16.mxu1 %v3418_v5 }
 0x29a   :  { %2431 = vmatpush1.bf16.msra.mxu1 %v3416_v6 }
 0x29b   :  { %2432 = vmatprep.subr.bf16.mxu1 %v3421_v50 }
 0x29e   :  { %2433 = vmatpush1.bf16.msra.mxu1 %v3419_v7 }
 0x29f   :  { %2434 = vmatprep.subr.bf16.mxu1 %v3424_v8 }
 0x2a2   :  { %2435 = vmatpush1.bf16.msra.mxu1 %v3422_v9 }
 0x2a3   :  { %2436 = vmatprep.subr.bf16.mxu1 %v3427_v10 }
 0x2a6   :  { %2437 = vmatpush1.bf16.msra.mxu1 %v3425_v11 }
 0x2a7   :  { %2438 = vmatprep.subr.bf16.mxu1 %v3430_v12 }
 0x2aa   :  { %2439 = vmatpush1.bf16.msra.mxu1 %v3428_v13 }
 0x2ad   :  { %2457 = vmatmul.mubr.bf16.vlgmr.msra.gmra.mrb[28].mxu1 %v2082_v15 }
 0x380   :  { %v2458_v21 = vpop.f32.mrb[28].mxu1 }
 0x381   :  { %v3028_v22 = vadd.f32 %v2458_v21, %v2136_v18  ;;  %v2460_v23 = vpop.f32.mrb[29].mxu1 }
 0x382   :  { %v3029_v48 = vadd.f32 %v2460_v23, %v2140_v19  ;;  %v2462_v27 = vpop.f32.mrb[30].mxu1 }
 0x383   :  { %v2465_v24 = vmax.f32 %v3028_v22, 0.0  ;;  %v2463_v0 = vpop.f32.mrb[31].mxu1 }
 0x384   :  { %v2466_v26 = vmax.f32 %v3029_v48, 0.0 }
 0x385   :  { %v2467_v29 = vpack.c.bf16 %v2465_v24, %v2465_v24 }
 0x386   :  { %v2468_v28 = vpack.c.bf16 %v2466_v26, %v2466_v26 }
 0x388   :  { %2901 = vmatprep.mubr.msk.bf16.mxu0 %vm2556_vm1, %v2468_v28 }
 0x389   :  { %2593 = vmatmul.mubr.bf16.vlgmr.msra.gmra.mrb[8].mxu0 %v2467_v29 }
 0x45c   :  { %v2594_v49 = vpop.f32.mrb[8].mxu0 }
 0x45d   :  { %v2595_v31 = vadd.f32 %v2890_v30, %v2594_v49  ;;  %v2596_v51 = vpop.f32.mrb[9].mxu0 }
 0x45e   :  { %v2597_v32 = vpop.f32.mrb[10].mxu0 }
 0x45f   :  { %2600 = vst [vmem:[#allocation5] sm:$0xff] %v2595_v31  ;;  %v2598_v33 = vpop.f32.mrb[11].mxu0 }
 0x460   :  { %2605 = vsyncadd [#allocation4], 96  ;;  %s3495_s6 = smov [#allocation5]  }
 0x461   :  { %s2606_s18 = sshll.u32 %s3495_s6, 4  ;;  %s2607_s18 = int_to_ptr.vmem [resolvable:$true] %s2606_s18 }
 0x462   :  { %s3463_s19 = scalar_lea.vmem %s2607_s18, 32  ;;  %s3467_s20 = scalar_lea.vmem %s2607_s18, 128 }
 0x463   :  { %p3464_p8 = scmp.ne.s32.totalorder %s2607_s18, %s3463_s19  ;;  %p3468_p9 = scmp.lt.s32.totalorder %s2607_s18, %s2607_s18 }
 0x464   :  { %p3469_p10 = scmp.lt.s32.totalorder %s3467_s20, %s3463_s19 }
 0x466   :  { %p3470_p11 = por %p3469_p10, %p3468_p9 }
 0x468   :  { %p3471_p12 = pnand %p3470_p11, %p3464_p8 }
 0x46a   :  { %3474 = shalt.err (!%p3471_p12)
}
 0x46b   :  { %s3475_s22 = scalar_lea.hbm %s4030_s9, 32 }
 0x46c   :  { %p3476_p13 = scmp.ne.s32.totalorder %s4030_s9, %s3475_s22  ;;  %p3479_p0 = scmp.lt.u32.totalorder %s3475_s22, %s4030_s9 }
 0x46e   :  { %p3481_p1 = pnand %p3479_p0, %p3476_p13 }
 0x470   :  { %3484 = shalt.err (!%p3481_p1)
}
 0x471   :  { %s3496_s25 = smov 32   ;;  %s3497_s26 = smov 2  }
 0x472   :  { %2612 = dma.vmem_to_hbm [thread:$0]  %s2607_s18, 32, %s4030_s9, [#allocation4], %s3496_s25, %s3496_s25, %s3497_s26  }
 0x473   :  { %3487 = dma.done.wait [#allocation4], 128  }
 0x474   :  { %3488 = vsyncadd [#allocation4], 4294967168 }
 0x475   :  { %2616 = vsyncpa [#allocation3], 1 }
 0x476   :  { %2617 = vsyncpa [#allocation4], 1 }

</bundles_post_ra>
